<compile_context>
chip_gen: v7x
topology: tpu7x:2x2x1
jax: 0.10.0
libtpu: 0.0.40
codegen_flags: <defaults>
</compile_context>

<pallas_src>
import math
from functools import partial

import jax
import jax.numpy as jnp
from jax import lax
from jax.experimental import pallas as pl
from jax.experimental.pallas import tpu as pltpu


# ---------------------------------------------------------------------------
# Per-generation VMEM sizing
# ---------------------------------------------------------------------------
_DEFAULT_VMEM = 64 * 1024 * 1024  # conservative: v7x per-TensorCore capacity


def _vmem_capacity_bytes():
    try:
        return int(pltpu.get_tpu_info().vmem_capacity_bytes)
    except Exception:
        return _DEFAULT_VMEM


def _vmem_limit_bytes():
    # 75% of physical VMEM, never below the 32 MiB scoped default.
    return max(32 * 1024 * 1024, int(0.75 * _vmem_capacity_bytes()))


_TILE_PREFS = (4096, 3072, 2048, 1536, 1152, 1024, 768, 640, 512, 384, 256,
               128, 64, 32, 16, 8)


def _tile_candidates(dim, *, lane):
    """Tile sizes dividing `dim` that satisfy the (8,128) layout rule."""
    align = 128 if lane else 8
    cands = {p for p in _TILE_PREFS if p <= dim and dim % p == 0 and p % align == 0}
    cands.add(dim)  # the full dimension is always legal
    return sorted(cands, reverse=True)


def _seq_tile(T):
    for p in (512, 256, 128):
        if T % p == 0:
            return p
    return T


# ---------------------------------------------------------------------------
# Linear:  y = x @ W + b     (W stored as (in, out) == PyTorch weight^T)
# ---------------------------------------------------------------------------
def _linear_kernel_fullk(x_ref, w_ref, b_ref, o_ref):
    # One clean (tm, K) @ (K, tn) MXU matmul per grid step, bias add fused.
    o_ref[...] = (jnp.dot(x_ref[...], w_ref[...],
                          preferred_element_type=jnp.float32)
                  + b_ref[...].astype(jnp.float32)).astype(o_ref.dtype)


def _linear_kernel_ksplit(x_ref, w_ref, b_ref, o_ref, acc_ref):
    @pl.when(pl.program_id(2) == 0)
    def _init():
        acc_ref[...] = jnp.zeros(acc_ref.shape, jnp.float32)

    acc_ref[...] += jnp.dot(x_ref[...], w_ref[...],
                            preferred_element_type=jnp.float32)

    @pl.when(pl.program_id(2) == pl.num_programs(2) - 1)
    def _store():
        o_ref[...] = (acc_ref[...]
                      + b_ref[...].astype(jnp.float32)).astype(o_ref.dtype)


def linear(x2d, w, b):
    M, K = x2d.shape
    K2, N = w.shape
    assert K == K2 and b.shape == (N,)
    itemsize = jnp.dtype(x2d.dtype).itemsize
    vmem_limit = _vmem_limit_bytes()
    budget = int(0.60 * vmem_limit)

    def bytes_needed(tm, tn, tk, acc):
        nbytes = 2 * (tm * tk + tk * tn + tn) * itemsize   # double-buffered inputs
        nbytes += 2 * tm * tn * itemsize                   # double-buffered output
        if acc:
            nbytes += tm * tn * 4                          # f32 accumulator
        return nbytes

    tms = _tile_candidates(M, lane=False)
    tns = _tile_candidates(N, lane=True)

    cost = pl.CostEstimate(
        flops=2 * M * N * K, transcendentals=0,
        bytes_accessed=(M * K + K * N + M * N + N) * itemsize)
    b2d = b.reshape(1, N)

    # Preferred path: full-K panels (no reduction axis, no accumulator).
    # Choose (tm, tn) minimizing re-fetch traffic ~ M*N*K*(1/tm + 1/tn).
    best = None
    for tm in tms:
        for tn in tns:
            if bytes_needed(tm, tn, K, acc=False) <= budget:
                score = (1.0 / tm + 1.0 / tn, -(tm * tn))
                if best is None or score < best[0]:
                    best = (score, tm, tn)
    if best is not None:
        _, tm, tn = best
        return pl.pallas_call(
            _linear_kernel_fullk,
            out_shape=jax.ShapeDtypeStruct((M, N), x2d.dtype),
            grid=(M // tm, N // tn),
            in_specs=[
                pl.BlockSpec((tm, K), lambda i, j: (i, 0)),
                pl.BlockSpec((K, tn), lambda i, j: (0, j)),
                pl.BlockSpec((1, tn), lambda i, j: (0, j)),
            ],
            out_specs=pl.BlockSpec((tm, tn), lambda i, j: (i, j)),
            compiler_params=pltpu.CompilerParams(
                dimension_semantics=("parallel", "parallel"),
                vmem_limit_bytes=vmem_limit),
            cost_estimate=cost,
        )(x2d, w, b2d)

    # Fallback for very large K: tile K (innermost, "arbitrary") with f32 scratch.
    tks = _tile_candidates(K, lane=True)
    choice = None
    for tm in tms:
        for tn in tns:
            for tk in tks:
                if bytes_needed(tm, tn, tk, acc=True) <= budget:
                    score = (1.0 / tm + 1.0 / tn, 1.0 / tk, -(tm * tn))
                    if choice is None or score < choice[0]:
                        choice = (score, tm, tn, tk)
    assert choice is not None, "no feasible tiling for linear()"
    _, tm, tn, tk = choice
    return pl.pallas_call(
        _linear_kernel_ksplit,
        out_shape=jax.ShapeDtypeStruct((M, N), x2d.dtype),
        grid=(M // tm, N // tn, K // tk),
        in_specs=[
            pl.BlockSpec((tm, tk), lambda i, j, k: (i, k)),
            pl.BlockSpec((tk, tn), lambda i, j, k: (k, j)),
            pl.BlockSpec((1, tn), lambda i, j, k: (0, j)),
        ],
        out_specs=pl.BlockSpec((tm, tn), lambda i, j, k: (i, j)),
        scratch_shapes=[pltpu.VMEM((tm, tn), jnp.float32)],
        compiler_params=pltpu.CompilerParams(
            dimension_semantics=("parallel", "parallel", "arbitrary"),
            vmem_limit_bytes=vmem_limit),
        cost_estimate=cost,
    )(x2d, w, b2d)


# ---------------------------------------------------------------------------
# Flash-style causal attention over the fused (B, T, 3C) qkv buffer.
# Grid = (batch, head_group, q_block, kv_block); kv_block is the reduction axis.
# ---------------------------------------------------------------------------
def _flash_attn_kernel(q_ref, k_ref, v_ref, o_ref, m_sc, l_sc, acc_sc,
                       *, n_group_heads, head_dim, tq, tkv):
    qi = pl.program_id(2)
    ki = pl.program_id(3)
    n_kv = pl.num_programs(3)
    G, hd = n_group_heads, head_dim

    @pl.when(ki == 0)
    def _init():
        m_sc[...] = jnp.full(m_sc.shape, -jnp.inf, jnp.float32)
        l_sc[...] = jnp.zeros(l_sc.shape, jnp.float32)
        acc_sc[...] = jnp.zeros(acc_sc.shape, jnp.float32)

    # Skip KV blocks entirely above the causal diagonal (~halves attention FLOPs).
    # TODO(synk): the BlockSpec pipeline still DMAs skipped blocks; a manual
    # emit_pipeline with a per-q-block KV trip count would also save that HBM traffic.
    @pl.when(ki * tkv < (qi + 1) * tq)
    def _compute():
        # Block-local causal mask from grid offsets (no full (T, T) iotas).
        row = qi * tq + lax.broadcasted_iota(jnp.int32, (tq, tkv), 0)
        col = ki * tkv + lax.broadcasted_iota(jnp.int32, (tq, tkv), 1)
        mask = col <= row
        neg_big = jnp.asarray(-1e30, jnp.float32)

        q_all = q_ref[0]      # (tq,  G*hd)  native dtype (1/sqrt(hd) pre-folded)
        k_all = k_ref[0]      # (tkv, G*hd)
        v_all = v_ref[0]      # (tkv, G*hd)

        for g in range(G):    # static unroll over heads in this group
            lo, hi = g * hd, (g + 1) * hd
            q_g, k_g, v_g = q_all[:, lo:hi], k_all[:, lo:hi], v_all[:, lo:hi]

            # Contract head_dim of both operands directly (no explicit k.T).
            s = jnp.einsum('qd,kd->qk', q_g, k_g,
                           preferred_element_type=jnp.float32)     # (tq, tkv) f32
            s = jnp.where(mask, s, neg_big)

            m_prev = m_sc[g]                                       # (tq, 1)
            m_new = jnp.maximum(m_prev, jnp.max(s, axis=-1, keepdims=True))
            alpha = jnp.exp(m_prev - m_new)
            p = jnp.exp(s - m_new)
            l_sc[g] = alpha * l_sc[g] + jnp.sum(p, axis=-1, keepdims=True)
            acc_sc[g] = alpha * acc_sc[g] + jnp.einsum(
                'qk,kd->qd', p.astype(v_g.dtype), v_g,
                preferred_element_type=jnp.float32)
            m_sc[g] = m_new

    @pl.when(ki == n_kv - 1)
    def _store():
        # Exact reciprocal (approx=True is emulated as bf16 in interpret mode
        # and adds ~4e-3 relative error).  One lane-dense (tq, G*hd) store.
        outs = [acc_sc[g] * (1.0 / l_sc[g]) for g in range(G)]
        o_ref[0] = jnp.concatenate(outs, axis=-1).astype(o_ref.dtype)


def causal_attention(qkv3, n_head):
    B, T, C3 = qkv3.shape
    C = C3 // 3
    hd = C // n_head

    # Pack heads so every q/k/v/output block is >=128 lanes wide when possible
    # (GPT-2 hd=64 -> 2 heads/step; hd=32 -> 4 heads/step).
    G = min(n_head, max(1, 128 // hd)) if hd < 128 else 1
    while n_head % G:
        G -= 1
    gw = G * hd
    n_hg = n_head // G

    tq = _seq_tile(T)
    tkv = _seq_tile(T)
    n_q, n_kv = T // tq, T // tkv

    itemsize = jnp.dtype(qkv3.dtype).itemsize
    cost = pl.CostEstimate(
        flops=4 * B * T * T * C,                 # upper bound (causal skip ~halves it)
        transcendentals=B * n_head * T * T,
        bytes_accessed=(3 * B * T * C + B * T * C) * itemsize)

    kernel = partial(_flash_attn_kernel, n_group_heads=G, head_dim=hd,
                     tq=tq, tkv=tkv)

    # q/k/v column blocks carved out of the fused qkv buffer by the index_map:
    # q occupies lane-block h, k lane-block n_hg + h, v lane-block 2*n_hg + h.
    return pl.pallas_call(
        kernel,
        out_shape=jax.ShapeDtypeStruct((B, T, C), qkv3.dtype),
        grid=(B, n_hg, n_q, n_kv),
        in_specs=[
            pl.BlockSpec((1, tq, gw), lambda b, h, qi, ki: (b, qi, h)),
            pl.BlockSpec((1, tkv, gw), lambda b, h, qi, ki: (b, ki, n_hg + h)),
            pl.BlockSpec((1, tkv, gw), lambda b, h, qi, ki: (b, ki, 2 * n_hg + h)),
        ],
        out_specs=pl.BlockSpec((1, tq, gw), lambda b, h, qi, ki: (b, qi, h)),
        scratch_shapes=[
            pltpu.VMEM((G, tq, 1), jnp.float32),    # running max
            pltpu.VMEM((G, tq, 1), jnp.float32),    # running denom
            pltpu.VMEM((G, tq, hd), jnp.float32),   # output accumulator
        ],
        compiler_params=pltpu.CompilerParams(
            # batch / head-group / q-block all parallel (megacore-friendly on v7x),
            # kv-block is the online-softmax reduction.
            dimension_semantics=("parallel", "parallel", "parallel", "arbitrary"),
            vmem_limit_bytes=_vmem_limit_bytes()),
        cost_estimate=cost,
    )(qkv3, qkv3, qkv3)


# ---------------------------------------------------------------------------
# Full module forward (eval mode: dropout = identity)
# ---------------------------------------------------------------------------
def gpt2_causal_self_attention(x, w_attn, b_attn, w_proj, b_proj, n_head):
    B, T, C = x.shape
    hd = C // n_head
    scale = 1.0 / math.sqrt(hd)

    # Fold 1/sqrt(hd) into the q columns of the qkv projection parameters.
    col_scale = jnp.concatenate([jnp.full((C,), scale, w_attn.dtype),
                                 jnp.ones((2 * C,), w_attn.dtype)])
    w_attn_s = w_attn * col_scale[None, :]
    b_attn_s = b_attn * col_scale

    qkv = linear(x.reshape(B * T, C), w_attn_s, b_attn_s)       # (B*T, 3C)
    y = causal_attention(qkv.reshape(B, T, 3 * C), n_head)      # (B, T, C)
    out = linear(y.reshape(B * T, C), w_proj, b_proj)           # (B*T, C)
    return out.reshape(B, T, C)


# ---------------------------------------------------------------------------
# Pure-JAX reference for validation
# ---------------------------------------------------------------------------
def reference(x, w_attn, b_attn, w_proj, b_proj, n_head):
    B, T, C = x.shape
    hd = C // n_head
    qkv = x @ w_attn + b_attn
    q, k, v = jnp.split(qkv, 3, axis=-1)
    q = q.reshape(B, T, n_head, hd).transpose(0, 2, 1, 3)
    k = k.reshape(B, T, n_head, hd).transpose(0, 2, 1, 3)
    v = v.reshape(B, T, n_head, hd).transpose(0, 2, 1, 3)
    s = jnp.einsum("bhqd,bhkd->bhqk", q, k) / math.sqrt(hd)
    mask = jnp.tril(jnp.ones((T, T), bool))
    s = jnp.where(mask, s, -jnp.inf)
    p = jax.nn.softmax(s, axis=-1)
    y = jnp.einsum("bhqk,bhkd->bhqd", p, v)
    y = y.transpose(0, 2, 1, 3).reshape(B, T, C)
    return y @ w_proj + b_proj


if __name__ == "__main__":
    # config: n_embd=128, n_head=4 (head_dim=32), bias=True, dropout=0.0 (eval)
    B, T, C, n_head = 2, 8, 128, 4

    key = jax.random.PRNGKey(0)
    kx, k1, k2, k3, k4 = jax.random.split(key, 5)
    x = jax.random.normal(kx, (B, T, C), jnp.float32)
    # Weights stored transposed vs. PyTorch nn.Linear: (in_features, out_features).
    w_attn = jax.random.normal(k1, (C, 3 * C), jnp.float32) / math.sqrt(C)
    b_attn = jax.random.normal(k2, (3 * C,), jnp.float32) * 0.02
    w_proj = jax.random.normal(k3, (C, C), jnp.float32) / math.sqrt(C)
    b_proj = jax.random.normal(k4, (C,), jnp.float32) * 0.02

    fwd = jax.jit(partial(gpt2_causal_self_attention, n_head=n_head))
    y = jax.block_until_ready(fwd(x, w_attn, b_attn, w_proj, b_proj))

    y_ref = reference(x, w_attn, b_attn, w_proj, b_proj, n_head)
    assert y.shape == (B, T, C)
    err = float(jnp.max(jnp.abs(y - y_ref)))
    assert jnp.allclose(y, y_ref, atol=2e-3, rtol=2e-3), f"max abs err {err}"

    print("KERNEL_OK")
</pallas_src>

<mosaic_0001>
module attributes {stable_mosaic.version = 11 : i64} {
  func.func @_linear_kernel_fullk(%arg0: i32, %arg1: i32, %arg2: memref<16x128xf32, #tpu.memory_space<vmem>>, %arg3: memref<128x384xf32, #tpu.memory_space<vmem>>, %arg4: memref<1x384xf32, #tpu.memory_space<vmem>>, %arg5: memref<16x384xf32, #tpu.memory_space<vmem>>) attributes {dimension_semantics = [#tpu.dimension_semantics<parallel>, #tpu.dimension_semantics<parallel>], iteration_bounds = array<i64: 1, 1>, scalar_prefetch = 0 : i64, scratch_operands = 0 : i64, tpu.core_type = #tpu.core_type<tc>, window_params = [{transform_indices = @transform_0, window_bounds = array<i64: 16, 128>}, {transform_indices = @transform_1, window_bounds = array<i64: 128, 384>}, {transform_indices = @transform_2, window_bounds = array<i64: 1, 384>}, {transform_indices = @transform_3, window_bounds = array<i64: 16, 384>}]} {
    %c0 = arith.constant 0 : index
    %c0_0 = arith.constant 0 : index
    %0 = vector.load %arg2[%c0, %c0_0] : memref<16x128xf32, #tpu.memory_space<vmem>>, vector<16x128xf32>
    %c0_1 = arith.constant 0 : index
    %c0_2 = arith.constant 0 : index
    %1 = vector.load %arg3[%c0_1, %c0_2] : memref<128x384xf32, #tpu.memory_space<vmem>>, vector<128x384xf32>
    %cst = arith.constant dense<0.000000e+00> : vector<16x384xf32>
    %2 = tpu.matmul %0, %1, %cst {dimension_numbers = #tpu.dot_dimension_numbers<[1], [0], [0], [1], [0, 0, 1, 1], [], []>} : vector<16x128xf32>, vector<128x384xf32>, vector<16x384xf32> -> vector<16x384xf32>
    %c0_3 = arith.constant 0 : index
    %c0_4 = arith.constant 0 : index
    %3 = vector.load %arg4[%c0_3, %c0_4] : memref<1x384xf32, #tpu.memory_space<vmem>>, vector<1x384xf32>
    %4 = vector.broadcast %3 : vector<1x384xf32> to vector<16x384xf32>
    %5 = arith.addf %2, %4 : vector<16x384xf32>
    %c0_5 = arith.constant 0 : index
    %c0_6 = arith.constant 0 : index
    %6 = vector.load %arg5[%c0_5, %c0_6] : memref<16x384xf32, #tpu.memory_space<vmem>>, vector<16x384xf32>
    tpu.vector_store %arg5[%c0_5, %c0_6], %5 {strides = array<i32>} : memref<16x384xf32, #tpu.memory_space<vmem>>, vector<16x384xf32>,
    return
  }
  func.func @transform_0(%arg0: i32, %arg1: i32) -> (i32, i32) {
    %c0_i32 = arith.constant 0 : i32
    %c0_i32_0 = arith.constant 0 : i32
    return %arg0, %c0_i32 : i32, i32
  }
  func.func @transform_1(%arg0: i32, %arg1: i32) -> (i32, i32) {
    %c0_i32 = arith.constant 0 : i32
    %c0_i32_0 = arith.constant 0 : i32
    return %c0_i32, %arg1 : i32, i32
  }
  func.func @transform_2(%arg0: i32, %arg1: i32) -> (i32, i32) {
    %c0_i32 = arith.constant 0 : i32
    %c0_i32_0 = arith.constant 0 : i32
    return %c0_i32, %arg1 : i32, i32
  }
  func.func @transform_3(%arg0: i32, %arg1: i32) -> (i32, i32) {
    %c0_i32 = arith.constant 0 : i32
    return %arg0, %arg1 : i32, i32
  }
}

module attributes {stable_mosaic.version = 11 : i64} {
  func.func @_linear_kernel_fullk(%arg0: i32, %arg1: i32, %arg2: memref<16x128xf32, #tpu.memory_space<vmem>>, %arg3: memref<128x128xf32, #tpu.memory_space<vmem>>, %arg4: memref<1x128xf32, #tpu.memory_space<vmem>>, %arg5: memref<16x128xf32, #tpu.memory_space<vmem>>) attributes {dimension_semantics = [#tpu.dimension_semantics<parallel>, #tpu.dimension_semantics<parallel>], iteration_bounds = array<i64: 1, 1>, scalar_prefetch = 0 : i64, scratch_operands = 0 : i64, tpu.core_type = #tpu.core_type<tc>, window_params = [{transform_indices = @transform_0, window_bounds = array<i64: 16, 128>}, {transform_indices = @transform_1, window_bounds = array<i64: 128, 128>}, {transform_indices = @transform_2, window_bounds = array<i64: 1, 128>}, {transform_indices = @transform_3, window_bounds = array<i64: 16, 128>}]} {
    %c0 = arith.constant 0 : index
    %c0_0 = arith.constant 0 : index
    %0 = vector.load %arg2[%c0, %c0_0] : memref<16x128xf32, #tpu.memory_space<vmem>>, vector<16x128xf32>
    %c0_1 = arith.constant 0 : index
    %c0_2 = arith.constant 0 : index
    %1 = vector.load %arg3[%c0_1, %c0_2] : memref<128x128xf32, #tpu.memory_space<vmem>>, vector<128x128xf32>
    %cst = arith.constant dense<0.000000e+00> : vector<16x128xf32>
    %2 = tpu.matmul %0, %1, %cst {dimension_numbers = #tpu.dot_dimension_numbers<[1], [0], [0], [1], [0, 0, 1, 1], [], []>} : vector<16x128xf32>, vector<128x128xf32>, vector<16x128xf32> -> vector<16x128xf32>
    %c0_3 = arith.constant 0 : index
    %c0_4 = arith.constant 0 : index
    %3 = vector.load %arg4[%c0_3, %c0_4] : memref<1x128xf32, #tpu.memory_space<vmem>>, vector<1x128xf32>
    %4 = vector.broadcast %3 : vector<1x128xf32> to vector<16x128xf32>
    %5 = arith.addf %2, %4 : vector<16x128xf32>
    %c0_5 = arith.constant 0 : index
    %c0_6 = arith.constant 0 : index
    %6 = vector.load %arg5[%c0_5, %c0_6] : memref<16x128xf32, #tpu.memory_space<vmem>>, vector<16x128xf32>
    tpu.vector_store %arg5[%c0_5, %c0_6], %5 {strides = array<i32>} : memref<16x128xf32, #tpu.memory_space<vmem>>, vector<16x128xf32>,
    return
  }
  func.func @transform_0(%arg0: i32, %arg1: i32) -> (i32, i32) {
    %c0_i32 = arith.constant 0 : i32
    %c0_i32_0 = arith.constant 0 : i32
    return %arg0, %c0_i32 : i32, i32
  }
  func.func @transform_1(%arg0: i32, %arg1: i32) -> (i32, i32) {
    %c0_i32 = arith.constant 0 : i32
    %c0_i32_0 = arith.constant 0 : i32
    return %c0_i32, %arg1 : i32, i32
  }
  func.func @transform_2(%arg0: i32, %arg1: i32) -> (i32, i32) {
    %c0_i32 = arith.constant 0 : i32
    %c0_i32_0 = arith.constant 0 : i32
    return %c0_i32, %arg1 : i32, i32
  }
  func.func @transform_3(%arg0: i32, %arg1: i32) -> (i32, i32) {
    %c0_i32 = arith.constant 0 : i32
    return %arg0, %arg1 : i32, i32
  }
}

module attributes {stable_mosaic.version = 11 : i64} {
  func.func @_flash_attn_kernel(%arg0: i32, %arg1: i32, %arg2: i32, %arg3: i32, %arg4: memref<1x8x128xf32, #tpu.memory_space<vmem>>, %arg5: memref<1x8x128xf32, #tpu.memory_space<vmem>>, %arg6: memref<1x8x128xf32, #tpu.memory_space<vmem>>, %arg7: memref<1x8x128xf32, #tpu.memory_space<vmem>>, %arg8: memref<4x8x1xf32, #tpu.memory_space<vmem>>, %arg9: memref<4x8x1xf32, #tpu.memory_space<vmem>>, %arg10: memref<4x8x32xf32, #tpu.memory_space<vmem>>) attributes {dimension_semantics = [#tpu.dimension_semantics<parallel>, #tpu.dimension_semantics<parallel>, #tpu.dimension_semantics<parallel>, #tpu.dimension_semantics<arbitrary>], iteration_bounds = array<i64: 2, 1, 1, 1>, scalar_prefetch = 0 : i64, scratch_operands = 3 : i64, tpu.core_type = #tpu.core_type<tc>, window_params = [{transform_indices = @transform_0, window_bounds = array<i64: 1, 8, 128>}, {transform_indices = @transform_1, window_bounds = array<i64: 1, 8, 128>}, {transform_indices = @transform_2, window_bounds = array<i64: 1, 8, 128>}, {transform_indices = @transform_3, window_bounds = array<i64: 1, 8, 128>}]} {
    %c0_i32 = arith.constant 0 : i32
    %0 = arith.cmpi eq, %arg3, %c0_i32 : i32
    %1 = arith.extui %0 : i1 to i32
    %c0_i32_0 = arith.constant 0 : i32
    %2 = arith.cmpi ne, %1, %c0_i32_0 : i32
    scf.if %2 {
      %cst = arith.constant 0xFF800000 : f32
      %12 = vector.broadcast %cst : f32 to vector<4x8x1xf32>
      %c0 = arith.constant 0 : index
      %c0_5 = arith.constant 0 : index
      %c0_6 = arith.constant 0 : index
      %13 = vector.load %arg8[%c0, %c0_5, %c0_6] : memref<4x8x1xf32, #tpu.memory_space<vmem>>, vector<4x8x1xf32>
      tpu.vector_store %arg8[%c0, %c0_5, %c0_6], %12 {strides = array<i32>} : memref<4x8x1xf32, #tpu.memory_space<vmem>>, vector<4x8x1xf32>,
      %cst_7 = arith.constant 0.000000e+00 : f32
      %14 = vector.broadcast %cst_7 : f32 to vector<4x8x1xf32>
      %c0_8 = arith.constant 0 : index
      %c0_9 = arith.constant 0 : index
      %c0_10 = arith.constant 0 : index
      %15 = vector.load %arg9[%c0_8, %c0_9, %c0_10] : memref<4x8x1xf32, #tpu.memory_space<vmem>>, vector<4x8x1xf32>
      tpu.vector_store %arg9[%c0_8, %c0_9, %c0_10], %14 {strides = array<i32>} : memref<4x8x1xf32, #tpu.memory_space<vmem>>, vector<4x8x1xf32>,
      %cst_11 = arith.constant 0.000000e+00 : f32
      %16 = vector.broadcast %cst_11 : f32 to vector<4x8x32xf32>
      %c0_12 = arith.constant 0 : index
      %c0_13 = arith.constant 0 : index
      %c0_14 = arith.constant 0 : index
      %17 = vector.load %arg10[%c0_12, %c0_13, %c0_14] : memref<4x8x32xf32, #tpu.memory_space<vmem>>, vector<4x8x32xf32>
      tpu.vector_store %arg10[%c0_12, %c0_13, %c0_14], %16 {strides = array<i32>} : memref<4x8x32xf32, #tpu.memory_space<vmem>>, vector<4x8x32xf32>,
    } else {
    }
    %c8_i32 = arith.constant 8 : i32
    %3 = arith.muli %arg3, %c8_i32 : i32
    %c1_i32 = arith.constant 1 : i32
    %4 = arith.addi %arg2, %c1_i32 : i32
    %c8_i32_1 = arith.constant 8 : i32
    %5 = arith.muli %4, %c8_i32_1 : i32
    %6 = arith.cmpi slt, %3, %5 : i32
    %7 = arith.extui %6 : i1 to i32
    %c0_i32_2 = arith.constant 0 : i32
    %8 = arith.cmpi ne, %7, %c0_i32_2 : i32
    scf.if %8 {
      %c8_i32_5 = arith.constant 8 : i32
      %12 = arith.muli %arg2, %c8_i32_5 : i32
      %13 = tpu.iota {dimensions = array<i32: 0>} : vector<8x8xi32>
      %14 = vector.broadcast %12 : i32 to vector<8x8xi32>
      %15 = arith.addi %14, %13 : vector<8x8xi32>
      %c8_i32_6 = arith.constant 8 : i32
      %16 = arith.muli %arg3, %c8_i32_6 : i32
      %17 = tpu.iota {dimensions = array<i32: 1>} : vector<8x8xi32>
      %18 = vector.broadcast %16 : i32 to vector<8x8xi32>
      %19 = arith.addi %18, %17 : vector<8x8xi32>
      %20 = arith.cmpi sle, %19, %15 : vector<8x8xi32>
      %c0 = arith.constant 0 : index
      %c0_7 = arith.constant 0 : index
      %c0_8 = arith.constant 0 : index
      %21 = vector.load %arg4[%c0, %c0_7, %c0_8] : memref<1x8x128xf32, #tpu.memory_space<vmem>>, vector<1x8x128xf32>
      %22 = vector.shape_cast %21 : vector<1x8x128xf32> to vector<8x128xf32>
      %c0_9 = arith.constant 0 : index
      %c0_10 = arith.constant 0 : index
      %c0_11 = arith.constant 0 : index
      %23 = vector.load %arg5[%c0_9, %c0_10, %c0_11] : memref<1x8x128xf32, #tpu.memory_space<vmem>>, vector<1x8x128xf32>
      %24 = vector.shape_cast %23 : vector<1x8x128xf32> to vector<8x128xf32>
      %c0_12 = arith.constant 0 : index
      %c0_13 = arith.constant 0 : index
      %c0_14 = arith.constant 0 : index
      %25 = vector.load %arg6[%c0_12, %c0_13, %c0_14] : memref<1x8x128xf32, #tpu.memory_space<vmem>>, vector<1x8x128xf32>
      %26 = vector.shape_cast %25 : vector<1x8x128xf32> to vector<8x128xf32>
      %27 = vector.extract_strided_slice %22 {offsets = [0, 0], sizes = [8, 32], strides = [1, 1]} : vector<8x128xf32> to vector<8x32xf32>
      %28 = vector.extract_strided_slice %24 {offsets = [0, 0], sizes = [8, 32], strides = [1, 1]} : vector<8x128xf32> to vector<8x32xf32>
      %29 = vector.extract_strided_slice %26 {offsets = [0, 0], sizes = [8, 32], strides = [1, 1]} : vector<8x128xf32> to vector<8x32xf32>
      "tpu.trace_start"() <{level = 10 : i32, message = "qd,kd->qk"}> : () -> ()
      %cst = arith.constant dense<0.000000e+00> : vector<8x8xf32>
      %30 = tpu.matmul %27, %28, %cst {dimension_numbers = #tpu.dot_dimension_numbers<[1], [1], [0], [0], [0, 0, 1, 0], [], []>} : vector<8x32xf32>, vector<8x32xf32>, vector<8x8xf32> -> vector<8x8xf32>
      %cst_15 = arith.constant -1.000000e+30 : f32
      "tpu.trace_stop"() : () -> ()
      %31 = vector.broadcast %cst_15 : f32 to vector<8x8xf32>
      %32 = arith.select %20, %30, %31 : vector<8x8xi1>, vector<8x8xf32>
      %c0_16 = arith.constant 0 : index
      %c0_17 = arith.constant 0 : index
      %c0_18 = arith.constant 0 : index
      %33 = vector.load %arg8[%c0_16, %c0_17, %c0_18] : memref<4x8x1xf32, #tpu.memory_space<vmem>>, vector<1x8x1xf32>
      %34 = vector.shape_cast %33 : vector<1x8x1xf32> to vector<8x1xf32>
      %cst_19 = arith.constant dense<0xFF800000> : vector<8xf32>
      %35 = vector.multi_reduction <maximumf>, %32, %cst_19 [1] : vector<8x8xf32> to vector<8xf32>
      %36 = vector.shape_cast %35 : vector<8xf32> to vector<8x1xf32>
      %37 = arith.maximumf %34, %36 : vector<8x1xf32>
      %38 = arith.subf %34, %37 : vector<8x1xf32>
      %39 = math.exp %38 : vector<8x1xf32>
      %40 = vector.broadcast %37 : vector<8x1xf32> to vector<8x8xf32>
      %41 = arith.subf %32, %40 : vector<8x8xf32>
      %42 = math.exp %41 : vector<8x8xf32>
      %c0_20 = arith.constant 0 : index
      %c0_21 = arith.constant 0 : index
      %c0_22 = arith.constant 0 : index
      %43 = vector.load %arg9[%c0_20, %c0_21, %c0_22] : memref<4x8x1xf32, #tpu.memory_space<vmem>>, vector<1x8x1xf32>
      %44 = vector.shape_cast %43 : vector<1x8x1xf32> to vector<8x1xf32>
      %45 = arith.mulf %39, %44 : vector<8x1xf32>
      %cst_23 = arith.constant dense<0.000000e+00> : vector<8xf32>
      %46 = vector.multi_reduction <add>, %42, %cst_23 [1] : vector<8x8xf32> to vector<8xf32>
      %47 = vector.shape_cast %46 : vector<8xf32> to vector<8x1xf32>
      %48 = arith.addf %45, %47 : vector<8x1xf32>
      %c0_24 = arith.constant 0 : index
      %c0_25 = arith.constant 0 : index
      %c0_26 = arith.constant 0 : index
      %49 = vector.load %arg9[%c0_24, %c0_25, %c0_26] : memref<4x8x1xf32, #tpu.memory_space<vmem>>, vector<1x8x1xf32>
      %50 = vector.shape_cast %49 : vector<1x8x1xf32> to vector<8x1xf32>
      %51 = vector.shape_cast %48 : vector<8x1xf32> to vector<1x8x1xf32>
      tpu.vector_store %arg9[%c0_24, %c0_25, %c0_26], %51 {strides = array<i32>} : memref<4x8x1xf32, #tpu.memory_space<vmem>>, vector<1x8x1xf32>,
      %c0_27 = arith.constant 0 : index
      %c0_28 = arith.constant 0 : index
      %c0_29 = arith.constant 0 : index
      %52 = vector.load %arg10[%c0_27, %c0_28, %c0_29] : memref<4x8x32xf32, #tpu.memory_space<vmem>>, vector<1x8x32xf32>
      %53 = vector.shape_cast %52 : vector<1x8x32xf32> to vector<8x32xf32>
      %54 = vector.broadcast %39 : vector<8x1xf32> to vector<8x32xf32>
      %55 = arith.mulf %54, %53 : vector<8x32xf32>
      "tpu.trace_start"() <{level = 10 : i32, message = "qk,kd->qd"}> : () -> ()
      %cst_30 = arith.constant dense<0.000000e+00> : vector<8x32xf32>
      %56 = tpu.matmul %42, %29, %cst_30 {dimension_numbers = #tpu.dot_dimension_numbers<[1], [0], [0], [1], [0, 0, 1, 1], [], []>} : vector<8x8xf32>, vector<8x32xf32>, vector<8x32xf32> -> vector<8x32xf32>
      "tpu.trace_stop"() : () -> ()
      %57 = arith.addf %55, %56 : vector<8x32xf32>
      %c0_31 = arith.constant 0 : index
      %c0_32 = arith.constant 0 : index
      %c0_33 = arith.constant 0 : index
      %58 = vector.load %arg10[%c0_31, %c0_32, %c0_33] : memref<4x8x32xf32, #tpu.memory_space<vmem>>, vector<1x8x32xf32>
      %59 = vector.shape_cast %58 : vector<1x8x32xf32> to vector<8x32xf32>
      %60 = vector.shape_cast %57 : vector<8x32xf32> to vector<1x8x32xf32>
      tpu.vector_store %arg10[%c0_31, %c0_32, %c0_33], %60 {strides = array<i32>} : memref<4x8x32xf32, #tpu.memory_space<vmem>>, vector<1x8x32xf32>,
      %c0_34 = arith.constant 0 : index
      %c0_35 = arith.constant 0 : index
      %c0_36 = arith.constant 0 : index
      %61 = vector.load %arg8[%c0_34, %c0_35, %c0_36] : memref<4x8x1xf32, #tpu.memory_space<vmem>>, vector<1x8x1xf32>
      %62 = vector.shape_cast %61 : vector<1x8x1xf32> to vector<8x1xf32>
      %63 = vector.shape_cast %37 : vector<8x1xf32> to vector<1x8x1xf32>
      tpu.vector_store %arg8[%c0_34, %c0_35, %c0_36], %63 {strides = array<i32>} : memref<4x8x1xf32, #tpu.memory_space<vmem>>, vector<1x8x1xf32>,
      %64 = vector.extract_strided_slice %22 {offsets = [0, 32], sizes = [8, 32], strides = [1, 1]} : vector<8x128xf32> to vector<8x32xf32>
      %65 = vector.extract_strided_slice %24 {offsets = [0, 32], sizes = [8, 32], strides = [1, 1]} : vector<8x128xf32> to vector<8x32xf32>
      %66 = vector.extract_strided_slice %26 {offsets = [0, 32], sizes = [8, 32], strides = [1, 1]} : vector<8x128xf32> to vector<8x32xf32>
      "tpu.trace_start"() <{level = 10 : i32, message = "qd,kd->qk"}> : () -> ()
      %cst_37 = arith.constant dense<0.000000e+00> : vector<8x8xf32>
      %67 = tpu.matmul %64, %65, %cst_37 {dimension_numbers = #tpu.dot_dimension_numbers<[1], [1], [0], [0], [0, 0, 1, 0], [], []>} : vector<8x32xf32>, vector<8x32xf32>, vector<8x8xf32> -> vector<8x8xf32>
      %cst_38 = arith.constant -1.000000e+30 : f32
      "tpu.trace_stop"() : () -> ()
      %68 = vector.broadcast %cst_38 : f32 to vector<8x8xf32>
      %69 = arith.select %20, %67, %68 : vector<8x8xi1>, vector<8x8xf32>
      %c1 = arith.constant 1 : index
      %c0_39 = arith.constant 0 : index
      %c0_40 = arith.constant 0 : index
      %70 = vector.load %arg8[%c1, %c0_39, %c0_40] : memref<4x8x1xf32, #tpu.memory_space<vmem>>, vector<1x8x1xf32>
      %71 = vector.shape_cast %70 : vector<1x8x1xf32> to vector<8x1xf32>
      %cst_41 = arith.constant dense<0xFF800000> : vector<8xf32>
      %72 = vector.multi_reduction <maximumf>, %69, %cst_41 [1] : vector<8x8xf32> to vector<8xf32>
      %73 = vector.shape_cast %72 : vector<8xf32> to vector<8x1xf32>
      %74 = arith.maximumf %71, %73 : vector<8x1xf32>
      %75 = arith.subf %71, %74 : vector<8x1xf32>
      %76 = math.exp %75 : vector<8x1xf32>
      %77 = vector.broadcast %74 : vector<8x1xf32> to vector<8x8xf32>
      %78 = arith.subf %69, %77 : vector<8x8xf32>
      %79 = math.exp %78 : vector<8x8xf32>
      %c1_42 = arith.constant 1 : index
      %c0_43 = arith.constant 0 : index
      %c0_44 = arith.constant 0 : index
      %80 = vector.load %arg9[%c1_42, %c0_43, %c0_44] : memref<4x8x1xf32, #tpu.memory_space<vmem>>, vector<1x8x1xf32>
      %81 = vector.shape_cast %80 : vector<1x8x1xf32> to vector<8x1xf32>
      %82 = arith.mulf %76, %81 : vector<8x1xf32>
      %cst_45 = arith.constant dense<0.000000e+00> : vector<8xf32>
      %83 = vector.multi_reduction <add>, %79, %cst_45 [1] : vector<8x8xf32> to vector<8xf32>
      %84 = vector.shape_cast %83 : vector<8xf32> to vector<8x1xf32>
      %85 = arith.addf %82, %84 : vector<8x1xf32>
      %c1_46 = arith.constant 1 : index
      %c0_47 = arith.constant 0 : index
      %c0_48 = arith.constant 0 : index
      %86 = vector.load %arg9[%c1_46, %c0_47, %c0_48] : memref<4x8x1xf32, #tpu.memory_space<vmem>>, vector<1x8x1xf32>
      %87 = vector.shape_cast %86 : vector<1x8x1xf32> to vector<8x1xf32>
      %88 = vector.shape_cast %85 : vector<8x1xf32> to vector<1x8x1xf32>
      tpu.vector_store %arg9[%c1_46, %c0_47, %c0_48], %88 {strides = array<i32>} : memref<4x8x1xf32, #tpu.memory_space<vmem>>, vector<1x8x1xf32>,
      %c1_49 = arith.constant 1 : index
      %c0_50 = arith.constant 0 : index
      %c0_51 = arith.constant 0 : index
      %89 = vector.load %arg10[%c1_49, %c0_50, %c0_51] : memref<4x8x32xf32, #tpu.memory_space<vmem>>, vector<1x8x32xf32>
      %90 = vector.shape_cast %89 : vector<1x8x32xf32> to vector<8x32xf32>
      %91 = vector.broadcast %76 : vector<8x1xf32> to vector<8x32xf32>
      %92 = arith.mulf %91, %90 : vector<8x32xf32>
      "tpu.trace_start"() <{level = 10 : i32, message = "qk,kd->qd"}> : () -> ()
      %cst_52 = arith.constant dense<0.000000e+00> : vector<8x32xf32>
      %93 = tpu.matmul %79, %66, %cst_52 {dimension_numbers = #tpu.dot_dimension_numbers<[1], [0], [0], [1], [0, 0, 1, 1], [], []>} : vector<8x8xf32>, vector<8x32xf32>, vector<8x32xf32> -> vector<8x32xf32>
      "tpu.trace_stop"() : () -> ()
      %94 = arith.addf %92, %93 : vector<8x32xf32>
      %c1_53 = arith.constant 1 : index
      %c0_54 = arith.constant 0 : index
      %c0_55 = arith.constant 0 : index
      %95 = vector.load %arg10[%c1_53, %c0_54, %c0_55] : memref<4x8x32xf32, #tpu.memory_space<vmem>>, vector<1x8x32xf32>
      %96 = vector.shape_cast %95 : vector<1x8x32xf32> to vector<8x32xf32>
      %97 = vector.shape_cast %94 : vector<8x32xf32> to vector<1x8x32xf32>
      tpu.vector_store %arg10[%c1_53, %c0_54, %c0_55], %97 {strides = array<i32>} : memref<4x8x32xf32, #tpu.memory_space<vmem>>, vector<1x8x32xf32>,
      %c1_56 = arith.constant 1 : index
      %c0_57 = arith.constant 0 : index
      %c0_58 = arith.constant 0 : index
      %98 = vector.load %arg8[%c1_56, %c0_57, %c0_58] : memref<4x8x1xf32, #tpu.memory_space<vmem>>, vector<1x8x1xf32>
      %99 = vector.shape_cast %98 : vector<1x8x1xf32> to vector<8x1xf32>
      %100 = vector.shape_cast %74 : vector<8x1xf32> to vector<1x8x1xf32>
      tpu.vector_store %arg8[%c1_56, %c0_57, %c0_58], %100 {strides = array<i32>} : memref<4x8x1xf32, #tpu.memory_space<vmem>>, vector<1x8x1xf32>,
      %101 = vector.extract_strided_slice %22 {offsets = [0, 64], sizes = [8, 32], strides = [1, 1]} : vector<8x128xf32> to vector<8x32xf32>
      %102 = vector.extract_strided_slice %24 {offsets = [0, 64], sizes = [8, 32], strides = [1, 1]} : vector<8x128xf32> to vector<8x32xf32>
      %103 = vector.extract_strided_slice %26 {offsets = [0, 64], sizes = [8, 32], strides = [1, 1]} : vector<8x128xf32> to vector<8x32xf32>
      "tpu.trace_start"() <{level = 10 : i32, message = "qd,kd->qk"}> : () -> ()
      %cst_59 = arith.constant dense<0.000000e+00> : vector<8x8xf32>
      %104 = tpu.matmul %101, %102, %cst_59 {dimension_numbers = #tpu.dot_dimension_numbers<[1], [1], [0], [0], [0, 0, 1, 0], [], []>} : vector<8x32xf32>, vector<8x32xf32>, vector<8x8xf32> -> vector<8x8xf32>
      %cst_60 = arith.constant -1.000000e+30 : f32
      "tpu.trace_stop"() : () -> ()
      %105 = vector.broadcast %cst_60 : f32 to vector<8x8xf32>
      %106 = arith.select %20, %104, %105 : vector<8x8xi1>, vector<8x8xf32>
      %c2 = arith.constant 2 : index
      %c0_61 = arith.constant 0 : index
      %c0_62 = arith.constant 0 : index
      %107 = vector.load %arg8[%c2, %c0_61, %c0_62] : memref<4x8x1xf32, #tpu.memory_space<vmem>>, vector<1x8x1xf32>
      %108 = vector.shape_cast %107 : vector<1x8x1xf32> to vector<8x1xf32>
      %cst_63 = arith.constant dense<0xFF800000> : vector<8xf32>
      %109 = vector.multi_reduction <maximumf>, %106, %cst_63 [1] : vector<8x8xf32> to vector<8xf32>
      %110 = vector.shape_cast %109 : vector<8xf32> to vector<8x1xf32>
      %111 = arith.maximumf %108, %110 : vector<8x1xf32>
      %112 = arith.subf %108, %111 : vector<8x1xf32>
      %113 = math.exp %112 : vector<8x1xf32>
      %114 = vector.broadcast %111 : vector<8x1xf32> to vector<8x8xf32>
      %115 = arith.subf %106, %114 : vector<8x8xf32>
      %116 = math.exp %115 : vector<8x8xf32>
      %c2_64 = arith.constant 2 : index
      %c0_65 = arith.constant 0 : index
      %c0_66 = arith.constant 0 : index
      %117 = vector.load %arg9[%c2_64, %c0_65, %c0_66] : memref<4x8x1xf32, #tpu.memory_space<vmem>>, vector<1x8x1xf32>
      %118 = vector.shape_cast %117 : vector<1x8x1xf32> to vector<8x1xf32>
      %119 = arith.mulf %113, %118 : vector<8x1xf32>
      %cst_67 = arith.constant dense<0.000000e+00> : vector<8xf32>
      %120 = vector.multi_reduction <add>, %116, %cst_67 [1] : vector<8x8xf32> to vector<8xf32>
      %121 = vector.shape_cast %120 : vector<8xf32> to vector<8x1xf32>
      %122 = arith.addf %119, %121 : vector<8x1xf32>
      %c2_68 = arith.constant 2 : index
      %c0_69 = arith.constant 0 : index
      %c0_70 = arith.constant 0 : index
      %123 = vector.load %arg9[%c2_68, %c0_69, %c0_70] : memref<4x8x1xf32, #tpu.memory_space<vmem>>, vector<1x8x1xf32>
      %124 = vector.shape_cast %123 : vector<1x8x1xf32> to vector<8x1xf32>
      %125 = vector.shape_cast %122 : vector<8x1xf32> to vector<1x8x1xf32>
      tpu.vector_store %arg9[%c2_68, %c0_69, %c0_70], %125 {strides = array<i32>} : memref<4x8x1xf32, #tpu.memory_space<vmem>>, vector<1x8x1xf32>,
      %c2_71 = arith.constant 2 : index
      %c0_72 = arith.constant 0 : index
      %c0_73 = arith.constant 0 : index
      %126 = vector.load %arg10[%c2_71, %c0_72, %c0_73] : memref<4x8x32xf32, #tpu.memory_space<vmem>>, vector<1x8x32xf32>
      %127 = vector.shape_cast %126 : vector<1x8x32xf32> to vector<8x32xf32>
      %128 = vector.broadcast %113 : vector<8x1xf32> to vector<8x32xf32>
      %129 = arith.mulf %128, %127 : vector<8x32xf32>
      "tpu.trace_start"() <{level = 10 : i32, message = "qk,kd->qd"}> : () -> ()
      %cst_74 = arith.constant dense<0.000000e+00> : vector<8x32xf32>
      %130 = tpu.matmul %116, %103, %cst_74 {dimension_numbers = #tpu.dot_dimension_numbers<[1], [0], [0], [1], [0, 0, 1, 1], [], []>} : vector<8x8xf32>, vector<8x32xf32>, vector<8x32xf32> -> vector<8x32xf32>
      "tpu.trace_stop"() : () -> ()
      %131 = arith.addf %129, %130 : vector<8x32xf32>
      %c2_75 = arith.constant 2 : index
      %c0_76 = arith.constant 0 : index
      %c0_77 = arith.constant 0 : index
      %132 = vector.load %arg10[%c2_75, %c0_76, %c0_77] : memref<4x8x32xf32, #tpu.memory_space<vmem>>, vector<1x8x32xf32>
      %133 = vector.shape_cast %132 : vector<1x8x32xf32> to vector<8x32xf32>
      %134 = vector.shape_cast %131 : vector<8x32xf32> to vector<1x8x32xf32>
      tpu.vector_store %arg10[%c2_75, %c0_76, %c0_77], %134 {strides = array<i32>} : memref<4x8x32xf32, #tpu.memory_space<vmem>>, vector<1x8x32xf32>,
      %c2_78 = arith.constant 2 : index
      %c0_79 = arith.constant 0 : index
      %c0_80 = arith.constant 0 : index
      %135 = vector.load %arg8[%c2_78, %c0_79, %c0_80] : memref<4x8x1xf32, #tpu.memory_space<vmem>>, vector<1x8x1xf32>
      %136 = vector.shape_cast %135 : vector<1x8x1xf32> to vector<8x1xf32>
      %137 = vector.shape_cast %111 : vector<8x1xf32> to vector<1x8x1xf32>
      tpu.vector_store %arg8[%c2_78, %c0_79, %c0_80], %137 {strides = array<i32>} : memref<4x8x1xf32, #tpu.memory_space<vmem>>, vector<1x8x1xf32>,
      %138 = vector.extract_strided_slice %22 {offsets = [0, 96], sizes = [8, 32], strides = [1, 1]} : vector<8x128xf32> to vector<8x32xf32>
      %139 = vector.extract_strided_slice %24 {offsets = [0, 96], sizes = [8, 32], strides = [1, 1]} : vector<8x128xf32> to vector<8x32xf32>
      %140 = vector.extract_strided_slice %26 {offsets = [0, 96], sizes = [8, 32], strides = [1, 1]} : vector<8x128xf32> to vector<8x32xf32>
      "tpu.trace_start"() <{level = 10 : i32, message = "qd,kd->qk"}> : () -> ()
      %cst_81 = arith.constant dense<0.000000e+00> : vector<8x8xf32>
      %141 = tpu.matmul %138, %139, %cst_81 {dimension_numbers = #tpu.dot_dimension_numbers<[1], [1], [0], [0], [0, 0, 1, 0], [], []>} : vector<8x32xf32>, vector<8x32xf32>, vector<8x8xf32> -> vector<8x8xf32>
      %cst_82 = arith.constant -1.000000e+30 : f32
      "tpu.trace_stop"() : () -> ()
      %142 = vector.broadcast %cst_82 : f32 to vector<8x8xf32>
      %143 = arith.select %20, %141, %142 : vector<8x8xi1>, vector<8x8xf32>
      %c3 = arith.constant 3 : index
      %c0_83 = arith.constant 0 : index
      %c0_84 = arith.constant 0 : index
      %144 = vector.load %arg8[%c3, %c0_83, %c0_84] : memref<4x8x1xf32, #tpu.memory_space<vmem>>, vector<1x8x1xf32>
      %145 = vector.shape_cast %144 : vector<1x8x1xf32> to vector<8x1xf32>
      %cst_85 = arith.constant dense<0xFF800000> : vector<8xf32>
      %146 = vector.multi_reduction <maximumf>, %143, %cst_85 [1] : vector<8x8xf32> to vector<8xf32>
      %147 = vector.shape_cast %146 : vector<8xf32> to vector<8x1xf32>
      %148 = arith.maximumf %145, %147 : vector<8x1xf32>
      %149 = arith.subf %145, %148 : vector<8x1xf32>
      %150 = math.exp %149 : vector<8x1xf32>
      %151 = vector.broadcast %148 : vector<8x1xf32> to vector<8x8xf32>
      %152 = arith.subf %143, %151 : vector<8x8xf32>
      %153 = math.exp %152 : vector<8x8xf32>
      %c3_86 = arith.constant 3 : index
      %c0_87 = arith.constant 0 : index
      %c0_88 = arith.constant 0 : index
      %154 = vector.load %arg9[%c3_86, %c0_87, %c0_88] : memref<4x8x1xf32, #tpu.memory_space<vmem>>, vector<1x8x1xf32>
      %155 = vector.shape_cast %154 : vector<1x8x1xf32> to vector<8x1xf32>
      %156 = arith.mulf %150, %155 : vector<8x1xf32>
      %cst_89 = arith.constant dense<0.000000e+00> : vector<8xf32>
      %157 = vector.multi_reduction <add>, %153, %cst_89 [1] : vector<8x8xf32> to vector<8xf32>
      %158 = vector.shape_cast %157 : vector<8xf32> to vector<8x1xf32>
      %159 = arith.addf %156, %158 : vector<8x1xf32>
      %c3_90 = arith.constant 3 : index
      %c0_91 = arith.constant 0 : index
      %c0_92 = arith.constant 0 : index
      %160 = vector.load %arg9[%c3_90, %c0_91, %c0_92] : memref<4x8x1xf32, #tpu.memory_space<vmem>>, vector<1x8x1xf32>
      %161 = vector.shape_cast %160 : vector<1x8x1xf32> to vector<8x1xf32>
      %162 = vector.shape_cast %159 : vector<8x1xf32> to vector<1x8x1xf32>
      tpu.vector_store %arg9[%c3_90, %c0_91, %c0_92], %162 {strides = array<i32>} : memref<4x8x1xf32, #tpu.memory_space<vmem>>, vector<1x8x1xf32>,
      %c3_93 = arith.constant 3 : index
      %c0_94 = arith.constant 0 : index
      %c0_95 = arith.constant 0 : index
      %163 = vector.load %arg10[%c3_93, %c0_94, %c0_95] : memref<4x8x32xf32, #tpu.memory_space<vmem>>, vector<1x8x32xf32>
      %164 = vector.shape_cast %163 : vector<1x8x32xf32> to vector<8x32xf32>
      %165 = vector.broadcast %150 : vector<8x1xf32> to vector<8x32xf32>
      %166 = arith.mulf %165, %164 : vector<8x32xf32>
      "tpu.trace_start"() <{level = 10 : i32, message = "qk,kd->qd"}> : () -> ()
      %cst_96 = arith.constant dense<0.000000e+00> : vector<8x32xf32>
      %167 = tpu.matmul %153, %140, %cst_96 {dimension_numbers = #tpu.dot_dimension_numbers<[1], [0], [0], [1], [0, 0, 1, 1], [], []>} : vector<8x8xf32>, vector<8x32xf32>, vector<8x32xf32> -> vector<8x32xf32>
      "tpu.trace_stop"() : () -> ()
      %168 = arith.addf %166, %167 : vector<8x32xf32>
      %c3_97 = arith.constant 3 : index
      %c0_98 = arith.constant 0 : index
      %c0_99 = arith.constant 0 : index
      %169 = vector.load %arg10[%c3_97, %c0_98, %c0_99] : memref<4x8x32xf32, #tpu.memory_space<vmem>>, vector<1x8x32xf32>
      %170 = vector.shape_cast %169 : vector<1x8x32xf32> to vector<8x32xf32>
      %171 = vector.shape_cast %168 : vector<8x32xf32> to vector<1x8x32xf32>
      tpu.vector_store %arg10[%c3_97, %c0_98, %c0_99], %171 {strides = array<i32>} : memref<4x8x32xf32, #tpu.memory_space<vmem>>, vector<1x8x32xf32>,
      %c3_100 = arith.constant 3 : index
      %c0_101 = arith.constant 0 : index
      %c0_102 = arith.constant 0 : index
      %172 = vector.load %arg8[%c3_100, %c0_101, %c0_102] : memref<4x8x1xf32, #tpu.memory_space<vmem>>, vector<1x8x1xf32>
      %173 = vector.shape_cast %172 : vector<1x8x1xf32> to vector<8x1xf32>
      %174 = vector.shape_cast %148 : vector<8x1xf32> to vector<1x8x1xf32>
      tpu.vector_store %arg8[%c3_100, %c0_101, %c0_102], %174 {strides = array<i32>} : memref<4x8x1xf32, #tpu.memory_space<vmem>>, vector<1x8x1xf32>,
    } else {
    }
    %c0_i32_3 = arith.constant 0 : i32
    %9 = arith.cmpi eq, %arg3, %c0_i32_3 : i32
    %10 = arith.extui %9 : i1 to i32
    %c0_i32_4 = arith.constant 0 : i32
    %11 = arith.cmpi ne, %10, %c0_i32_4 : i32
    scf.if %11 {
      %c0 = arith.constant 0 : index
      %c0_5 = arith.constant 0 : index
      %c0_6 = arith.constant 0 : index
      %12 = vector.load %arg10[%c0, %c0_5, %c0_6] : memref<4x8x32xf32, #tpu.memory_space<vmem>>, vector<1x8x32xf32>
      %13 = vector.shape_cast %12 : vector<1x8x32xf32> to vector<8x32xf32>
      %c0_7 = arith.constant 0 : index
      %c0_8 = arith.constant 0 : index
      %c0_9 = arith.constant 0 : index
      %14 = vector.load %arg9[%c0_7, %c0_8, %c0_9] : memref<4x8x1xf32, #tpu.memory_space<vmem>>, vector<1x8x1xf32>
      %15 = vector.shape_cast %14 : vector<1x8x1xf32> to vector<8x1xf32>
      %cst = arith.constant 1.000000e+00 : f32
      %16 = vector.broadcast %cst : f32 to vector<8x1xf32>
      %17 = arith.divf %16, %15 : vector<8x1xf32>
      %18 = vector.broadcast %17 : vector<8x1xf32> to vector<8x32xf32>
      %19 = arith.mulf %13, %18 : vector<8x32xf32>
      %c1 = arith.constant 1 : index
      %c0_10 = arith.constant 0 : index
      %c0_11 = arith.constant 0 : index
      %20 = vector.load %arg10[%c1, %c0_10, %c0_11] : memref<4x8x32xf32, #tpu.memory_space<vmem>>, vector<1x8x32xf32>
      %21 = vector.shape_cast %20 : vector<1x8x32xf32> to vector<8x32xf32>
      %c1_12 = arith.constant 1 : index
      %c0_13 = arith.constant 0 : index
      %c0_14 = arith.constant 0 : index
      %22 = vector.load %arg9[%c1_12, %c0_13, %c0_14] : memref<4x8x1xf32, #tpu.memory_space<vmem>>, vector<1x8x1xf32>
      %23 = vector.shape_cast %22 : vector<1x8x1xf32> to vector<8x1xf32>
      %cst_15 = arith.constant 1.000000e+00 : f32
      %24 = vector.broadcast %cst_15 : f32 to vector<8x1xf32>
      %25 = arith.divf %24, %23 : vector<8x1xf32>
      %26 = vector.broadcast %25 : vector<8x1xf32> to vector<8x32xf32>
      %27 = arith.mulf %21, %26 : vector<8x32xf32>
      %c2 = arith.constant 2 : index
      %c0_16 = arith.constant 0 : index
      %c0_17 = arith.constant 0 : index
      %28 = vector.load %arg10[%c2, %c0_16, %c0_17] : memref<4x8x32xf32, #tpu.memory_space<vmem>>, vector<1x8x32xf32>
      %29 = vector.shape_cast %28 : vector<1x8x32xf32> to vector<8x32xf32>
      %c2_18 = arith.constant 2 : index
      %c0_19 = arith.constant 0 : index
      %c0_20 = arith.constant 0 : index
      %30 = vector.load %arg9[%c2_18, %c0_19, %c0_20] : memref<4x8x1xf32, #tpu.memory_space<vmem>>, vector<1x8x1xf32>
      %31 = vector.shape_cast %30 : vector<1x8x1xf32> to vector<8x1xf32>
      %cst_21 = arith.constant 1.000000e+00 : f32
      %32 = vector.broadcast %cst_21 : f32 to vector<8x1xf32>
      %33 = arith.divf %32, %31 : vector<8x1xf32>
      %34 = vector.broadcast %33 : vector<8x1xf32> to vector<8x32xf32>
      %35 = arith.mulf %29, %34 : vector<8x32xf32>
      %c3 = arith.constant 3 : index
      %c0_22 = arith.constant 0 : index
      %c0_23 = arith.constant 0 : index
      %36 = vector.load %arg10[%c3, %c0_22, %c0_23] : memref<4x8x32xf32, #tpu.memory_space<vmem>>, vector<1x8x32xf32>
      %37 = vector.shape_cast %36 : vector<1x8x32xf32> to vector<8x32xf32>
      %c3_24 = arith.constant 3 : index
      %c0_25 = arith.constant 0 : index
      %c0_26 = arith.constant 0 : index
      %38 = vector.load %arg9[%c3_24, %c0_25, %c0_26] : memref<4x8x1xf32, #tpu.memory_space<vmem>>, vector<1x8x1xf32>
      %39 = vector.shape_cast %38 : vector<1x8x1xf32> to vector<8x1xf32>
      %cst_27 = arith.constant 1.000000e+00 : f32
      %40 = vector.broadcast %cst_27 : f32 to vector<8x1xf32>
      %41 = arith.divf %40, %39 : vector<8x1xf32>
      %42 = vector.broadcast %41 : vector<8x1xf32> to vector<8x32xf32>
      %43 = arith.mulf %37, %42 : vector<8x32xf32>
      %44 = tpu.concatenate %19, %27, %35, %43 in 1 : vector<8x32xf32>, vector<8x32xf32>, vector<8x32xf32>, vector<8x32xf32> -> vector<8x128xf32>
      %c0_28 = arith.constant 0 : index
      %c0_29 = arith.constant 0 : index
      %c0_30 = arith.constant 0 : index
      %45 = vector.load %arg7[%c0_28, %c0_29, %c0_30] : memref<1x8x128xf32, #tpu.memory_space<vmem>>, vector<1x8x128xf32>
      %46 = vector.shape_cast %45 : vector<1x8x128xf32> to vector<8x128xf32>
      %47 = vector.shape_cast %44 : vector<8x128xf32> to vector<1x8x128xf32>
      tpu.vector_store %arg7[%c0_28, %c0_29, %c0_30], %47 {strides = array<i32>} : memref<1x8x128xf32, #tpu.memory_space<vmem>>, vector<1x8x128xf32>,
    } else {
    }
    return
  }
  func.func @transform_0(%arg0: i32, %arg1: i32, %arg2: i32, %arg3: i32) -> (i32, i32, i32) {
    %c0_i32 = arith.constant 0 : i32
    return %arg0, %arg2, %arg1 : i32, i32, i32
  }
  func.func @transform_1(%arg0: i32, %arg1: i32, %arg2: i32, %arg3: i32) -> (i32, i32, i32) {
    %c1_i32 = arith.constant 1 : i32
    %0 = arith.addi %c1_i32, %arg1 : i32
    %c0_i32 = arith.constant 0 : i32
    return %arg0, %arg3, %0 : i32, i32, i32
  }
  func.func @transform_2(%arg0: i32, %arg1: i32, %arg2: i32, %arg3: i32) -> (i32, i32, i32) {
    %c2_i32 = arith.constant 2 : i32
    %0 = arith.addi %c2_i32, %arg1 : i32
    %c0_i32 = arith.constant 0 : i32
    return %arg0, %arg3, %0 : i32, i32, i32
  }
  func.func @transform_3(%arg0: i32, %arg1: i32, %arg2: i32, %arg3: i32) -> (i32, i32, i32) {
    %c0_i32 = arith.constant 0 : i32
    return %arg0, %arg2, %arg1 : i32, i32, i32
  }
}

</mosaic_0001>

<bundles_post_ra>
// kernel: mul.9
= control target key start
LH: loop header
LB: loop body
LE: loop exit
PB: predicated region body
PF: predicated region fallthrough
CT: control target
= control target key end

     0   :  { %s34_s0 = inlined_call_operand.vmem [shape: f32[384], index: 0, kind: input, shape index: {}]   ;;  %s35_s1 = inlined_call_operand.vmem [shape: f32[384], index: 1, kind: input, shape index: {}]   ;;  %s36_s2 = inlined_call_operand.vmem [shape: f32[384], index: 2, kind: output, shape index: {}]  }
   0x1   :  { %v3_v0 = vld [vmem:[%s34_s0] sm:$0x7] }
   0x2   :  { %v4_v1 = vld [vmem:[%s35_s1] sm:$0x7] }
   0x3   :  { %v7_v2 = vmul.f32 %v4_v1, %v3_v0 }
   0x5   :  { %9 = vst [vmem:[%s36_s2] sm:$0xf] %v7_v2 }

// kernel: gpt2_causal_self_attention.3
= control target key start
LH: loop header
LB: loop body
LE: loop exit
PB: predicated region body
PF: predicated region fallthrough
CT: control target
= control target key end

     0   :  { %v361_v3 = vmov 0.0   ;;  %s555_s1 = inlined_call_operand.vmem [shape: f32[128,384], index: 1, kind: input, shape index: {}]   ;;  %s556_s0 = inlined_call_operand.vmem [shape: f32[16,128], index: 0, kind: input, shape index: {}]   ;;  %s557_s2 = inlined_call_operand.vmem [shape: f32[1,384], index: 2, kind: input, shape index: {}]   ;;  %s558_s3 = inlined_call_operand.vmem [shape: f32[16,384], index: 3, kind: output, shape index: {}]  }
   0x1   :  { %v17_v0 = vld [vmem:[%s555_s1 + $0x8] sm:$0xff]  ;;  %v20_v1 = vld [vmem:[%s555_s1 + $0x20] sm:$0xff]  ;;  %145 = vmatprep.mubr.f32.mxu0 %v361_v3  ;;  %v19_v5 = vld [vmem:[%s555_s1 + $0x18] sm:$0xff] }
   0x2   :  { %v16_v2 = vld [vmem:[%s555_s1] sm:$0xff]  ;;  %v296_v4 = vpack.c.bf16 %v20_v1, %v17_v0  ;;  %v18_v6 = vld [vmem:[%s555_s1 + $0x10] sm:$0xff]  ;;  %v21_v7 = vld [vmem:[%s555_s1 + $0x28] sm:$0xff] }
   0x3   :  { %v298_v8 = vpack.c.bf16 %v19_v5, %v16_v2  ;;  %v328_v9 = vpack.c.bf16 %v21_v7, %v18_v6  ;;  %v23_v10 = vld [vmem:[%s555_s1 + $0x38] sm:$0xff]  ;;  %v26_v11 = vld [vmem:[%s555_s1 + $0x50] sm:$0xff]  ;;  %v25_v14 = vld [vmem:[%s555_s1 + $0x48] sm:$0xff] }
   0x4   :  { %v22_v12 = vld [vmem:[%s555_s1 + $0x30] sm:$0xff]  ;;  %297 = vmatprep.subr.bf16.mxu0 %v296_v4  ;;  %v300_v13 = vpack.c.bf16 %v26_v11, %v23_v10  ;;  %v24_v15 = vld [vmem:[%s555_s1 + $0x40] sm:$0xff]  ;;  %v27_v16 = vld [vmem:[%s555_s1 + $0x58] sm:$0xff] }
   0x5   :  { %299 = vmatpush1.bf16.msra.mxu0 %v298_v8  ;;  %329 = vmatprep.subr.bf16.mxu1 %v328_v9  ;;  %v302_v17 = vpack.c.bf16 %v25_v14, %v22_v12  ;;  %v332_v18 = vpack.c.bf16 %v27_v16, %v24_v15  ;;  %v29_v19 = vld [vmem:[%s555_s1 + $0x68] sm:$0xff]  ;;  %v32_v20 = vld [vmem:[%s555_s1 + $0x80] sm:$0xff]  ;;  %v31_v23 = vld [vmem:[%s555_s1 + $0x78] sm:$0xff]  ;;  %v66_v12 = vlaneseq }
   0x6   :  { %v28_v21 = vld [vmem:[%s555_s1 + $0x60] sm:$0xff]  ;;  %301 = vmatprep.subr.bf16.mxu0 %v300_v13  ;;  %331 = vmatpush3.bf16.msra.mxu1 %v328_v9  ;;  %v304_v22 = vpack.c.bf16 %v32_v20, %v29_v19  ;;  %v30_v24 = vld [vmem:[%s555_s1 + $0x70] sm:$0xff]  ;;  %v33_v25 = vld [vmem:[%s555_s1 + $0x88] sm:$0xff] }
   0x7   :  { %333 = vmatprep.subr.bf16.mxu1 %v332_v18  ;;  %v336_v26 = vpack.c.bf16 %v33_v25, %v30_v24  ;;  %v35_v27 = vld [vmem:[%s555_s1 + $0x98] sm:$0xff]  ;;  %v38_v28 = vld [vmem:[%s555_s1 + $0xb0] sm:$0xff]  ;;  %v36_v29 = vld [vmem:[%s555_s1 + $0xa0] sm:$0xff]  ;;  %v306_v31 = vpack.c.bf16 %v31_v23, %v28_v21  ;;  %v67_v13 = vshrl.u32 %v66_v12, 7 }
   0x8   :  { %v39_v30 = vld [vmem:[%s555_s1 + $0xb8] sm:$0xff]  ;;  %v308_v32 = vpack.c.bf16 %v38_v28, %v35_v27  ;;  %v34_v33 = vld [vmem:[%s555_s1 + $0x90] sm:$0xff]  ;;  %v37_v34 = vld [vmem:[%s555_s1 + $0xa8] sm:$0xff] }
   0x9   :  { %303 = vmatpush1.bf16.msra.mxu0 %v302_v17  ;;  %v340_v35 = vpack.c.bf16 %v39_v30, %v36_v29  ;;  %v41_v36 = vld [vmem:[%s555_s1 + $0xc8] sm:$0xff]  ;;  %v44_v37 = vld [vmem:[%s555_s1 + $0xe0] sm:$0xff]  ;;  %v42_v38 = vld [vmem:[%s555_s1 + $0xd0] sm:$0xff]  ;;  %v310_v40 = vpack.c.bf16 %v37_v34, %v34_v33  ;;  %v68_v14 = vsub.s32 0, %v67_v13  ;;  %v72_v16 = vsub.s32 1, %v67_v13 }
   0xa   :  { %305 = vmatprep.subr.bf16.mxu0 %v304_v22  ;;  %335 = vmatpush3.bf16.msra.mxu1 %v332_v18  ;;  %v45_v39 = vld [vmem:[%s555_s1 + $0xe8] sm:$0xff]  ;;  %v312_v41 = vpack.c.bf16 %v44_v37, %v41_v36  ;;  %v40_v42 = vld [vmem:[%s555_s1 + $0xc0] sm:$0xff]  ;;  %v43_v43 = vld [vmem:[%s555_s1 + $0xd8] sm:$0xff]  ;;  %v76_v17 = vsub.s32 2, %v67_v13 }
   0xb   :  { %337 = vmatprep.subr.bf16.mxu1 %v336_v26  ;;  %v344_v44 = vpack.c.bf16 %v45_v39, %v42_v38  ;;  %v47_v45 = vld [vmem:[%s555_s1 + $0xf8] sm:$0xff]  ;;  %v50_v46 = vld [vmem:[%s555_s1 + $0x110] sm:$0xff]  ;;  %v48_v47 = vld [vmem:[%s555_s1 + $0x100] sm:$0xff]  ;;  %v314_v49 = vpack.c.bf16 %v43_v43, %v40_v42 }
   0xc   :  { %v51_v48 = vld [vmem:[%s555_s1 + $0x118] sm:$0xff]  ;;  %v316_v50 = vpack.c.bf16 %v50_v46, %v47_v45  ;;  %v46_v51 = vld [vmem:[%s555_s1 + $0xf0] sm:$0xff]  ;;  %v49_v52 = vld [vmem:[%s555_s1 + $0x108] sm:$0xff] }
   0xd   :  { %307 = vmatpush1.bf16.msra.mxu0 %v306_v31  ;;  %v14_v53 = vld [vmem:[%s556_s0] sm:$0xff]  ;;  %v348_v54 = vpack.c.bf16 %v51_v48, %v48_v47  ;;  %v53_v55 = vld [vmem:[%s555_s1 + $0x128] sm:$0xff]  ;;  %v54_v57 = vld [vmem:[%s555_s1 + $0x130] sm:$0xff]  ;;  %v318_v59 = vpack.c.bf16 %v49_v52, %v46_v51 }
   0xe   :  { %309 = vmatprep.subr.bf16.mxu0 %v308_v32  ;;  %339 = vmatpush3.bf16.msra.mxu1 %v336_v26  ;;  %v56_v56 = vld [vmem:[%s555_s1 + $0x140] sm:$0xff]  ;;  %v57_v58 = vld [vmem:[%s555_s1 + $0x148] sm:$0xff]  ;;  %v55_v62 = vld [vmem:[%s555_s1 + $0x138] sm:$0xff] }
   0xf   :  { %341 = vmatprep.subr.bf16.mxu1 %v340_v35  ;;  %293 = vmatprep.mubr.f32.mxu1 %v14_v53  ;;  %v320_v60 = vpack.c.bf16 %v56_v56, %v53_v55  ;;  %v52_v61 = vld [vmem:[%s555_s1 + $0x120] sm:$0xff]  ;;  %v352_v63 = vpack.c.bf16 %v57_v58, %v54_v57  ;;  %v59_v0 = vld [vmem:[%s555_s1 + $0x158] sm:$0xff]  ;;  %v62_v1 = vld [vmem:[%s555_s1 + $0x170] sm:$0xff] }
  0x10   :  { %v60_v2 = vld [vmem:[%s555_s1 + $0x160] sm:$0xff]  ;;  %v63_v4 = vld [vmem:[%s555_s1 + $0x178] sm:$0xff]  ;;  %v322_v5 = vpack.c.bf16 %v55_v62, %v52_v61  ;;  %v324_v6 = vpack.c.bf16 %v62_v1, %v59_v0  ;;  %v58_v7 = vld [vmem:[%s555_s1 + $0x150] sm:$0xff] }
  0x11   :  { %311 = vmatpush1.bf16.msra.mxu0 %v310_v40  ;;  %v61_v8 = vld [vmem:[%s555_s1 + $0x168] sm:$0xff]  ;;  %v356_v9 = vpack.c.bf16 %v63_v4, %v60_v2  ;;  %v64_v15 = vld [vmem:[%s557_s2] sm:$0x7] }
  0x12   :  { %313 = vmatprep.subr.bf16.mxu0 %v312_v41  ;;  %343 = vmatpush3.bf16.msra.mxu1 %v340_v35  ;;  %v326_v10 = vpack.c.bf16 %v61_v8, %v58_v7  ;;  %v15_v11 = vld [vmem:[%s556_s0 + $0x8] sm:$0xff]  ;;  %v69_v18 = vrot.slane %v64_v15, %v68_v14  ;;  %v73_v19 = vrot.slane %v64_v15, %v72_v16 }
  0x13   :  { %345 = vmatprep.subr.bf16.mxu1 %v344_v44  ;;  %v77_v20 = vrot.slane %v64_v15, %v76_v17 }
  0x15   :  { %315 = vmatpush1.bf16.msra.mxu0 %v314_v49 }
  0x16   :  { %317 = vmatprep.subr.bf16.mxu0 %v316_v50  ;;  %347 = vmatpush3.bf16.msra.mxu1 %v344_v44 }
  0x17   :  { %349 = vmatprep.subr.bf16.mxu1 %v348_v54 }
  0x19   :  { %319 = vmatpush1.bf16.msra.mxu0 %v318_v59 }
  0x1a   :  { %321 = vmatprep.subr.bf16.mxu0 %v320_v60  ;;  %351 = vmatpush3.bf16.msra.mxu1 %v348_v54 }
  0x1b   :  { %353 = vmatprep.subr.bf16.mxu1 %v352_v63 }
  0x1d   :  { %323 = vmatpush1.bf16.msra.mxu0 %v322_v5 }
  0x1e   :  { %325 = vmatprep.subr.bf16.mxu0 %v324_v6  ;;  %355 = vmatpush3.bf16.msra.mxu1 %v352_v63 }
  0x1f   :  { %357 = vmatprep.subr.bf16.mxu1 %v356_v9 }
  0x21   :  { %327 = vmatpush1.bf16.msra.mxu0 %v326_v10 }
  0x22   :  { %359 = vmatpush3.bf16.msra.mxu1 %v356_v9 }
  0x24   :  { %146 = vmatmul.mubr.f32.vlgmr.msra.gmra.mrb[0].mxu0 %v14_v53 }
  0x25   :  { %151 = vmatprep.mubr.f32.mxu0 %v361_v3  ;;  %294 = vmatmul.mubr.f32.vlgmr.msra.gmra.mrb[0].mxu1 %v15_v11 }
  0x28   :  { %152 = vmatmul.mubr.f32.gmra.mrb[2].mxu0 %v15_v11 }
  0xf7   :  { %v147_v21 = vpop.f32.mrb[0].mxu0 }
  0xf8   :  { %v148_v22 = vadd.f32 %v147_v21, %v69_v18  ;;  %v149_v23 = vpop.f32.mrb[1].mxu0  ;;  %v295_v24 = vpop.f32.mrb[0].mxu1 }
  0xf9   :  { %v150_v25 = vadd.f32 %v149_v23, %v73_v19  ;;  %v230_v3 = vadd.f32 %v295_v24, %v77_v20  ;;  %v224_v26 = vpop.f32.mrb[1].mxu1 }
  0xfa   :  { %233 = vst [vmem:[%s558_s3] sm:$0xff] %v148_v22  ;;  %v225_v27 = vadd.f32 %v224_v26, %v77_v20 }
  0xfb   :  { %234 = vst [vmem:[%s558_s3 + $0x8] sm:$0xff] %v150_v25  ;;  %238 = vst [vmem:[%s558_s3 + $0x28] sm:$0xff] %v230_v3  ;;  %v153_v28 = vpop.f32.mrb[2].mxu0 }
  0xfc   :  { %v154_v29 = vadd.f32 %v153_v28, %v69_v18  ;;  %235 = vst [vmem:[%s558_s3 + $0x10] sm:$0xff] %v225_v27  ;;  %v155_v30 = vpop.f32.mrb[3].mxu0 }
  0xfd   :  { %v156_v31 = vadd.f32 %v155_v30, %v73_v19 }
  0xfe   :  { %236 = vst [vmem:[%s558_s3 + $0x18] sm:$0xff] %v154_v29 }
  0xff   :  { %237 = vst [vmem:[%s558_s3 + $0x20] sm:$0xff] %v156_v31 }

// kernel: gpt2_causal_self_attention.5
= control target key start
LH: loop header
LB: loop body
LE: loop exit
PB: predicated region body
PF: predicated region fallthrough
CT: control target
= control target key end

     0   :  { %s338_s0 = inlined_call_operand.vmem [shape: f32[16,128], index: 0, kind: input, shape index: {}]   ;;  %s339_s1 = inlined_call_operand.vmem [shape: f32[128,128], index: 1, kind: input, shape index: {}]   ;;  %s340_s2 = inlined_call_operand.vmem [shape: f32[1,128], index: 2, kind: input, shape index: {}]   ;;  %s341_s3 = inlined_call_operand.hbm [shape: f32[16,128], index: 3, kind: output, shape index: {}]  }
   0x1   :  { %v17_v0 = vld [vmem:[%s339_s1] sm:$0xff]  ;;  %v18_v1 = vld [vmem:[%s339_s1 + $0x8] sm:$0xff]  ;;  %v19_v2 = vld [vmem:[%s339_s1 + $0x10] sm:$0xff] }
   0x2   :  { %v187_v3 = vpack.c.bf16 %v18_v1, %v17_v0  ;;  %v20_v4 = vld [vmem:[%s339_s1 + $0x18] sm:$0xff]  ;;  %v21_v6 = vld [vmem:[%s339_s1 + $0x20] sm:$0xff]  ;;  %v22_v7 = vld [vmem:[%s339_s1 + $0x28] sm:$0xff] }
   0x3   :  { %v191_v5 = vpack.c.bf16 %v20_v4, %v19_v2  ;;  %v195_v8 = vpack.c.bf16 %v22_v7, %v21_v6  ;;  %v15_v9 = vld [vmem:[%s338_s0] sm:$0xff]  ;;  %v23_v10 = vld [vmem:[%s339_s1 + $0x30] sm:$0xff]  ;;  %v24_v11 = vld [vmem:[%s339_s1 + $0x38] sm:$0xff] }
   0x4   :  { %188 = vmatprep.subr.bf16.mxu0 %v187_v3  ;;  %184 = vmatprep.mubr.f32.mxu0 %v15_v9 }
   0x5   :  { %190 = vmatpush3.bf16.msra.mxu0 %v187_v3 }
   0x6   :  { %192 = vmatprep.subr.bf16.mxu0 %v191_v5 }
   0x7   :  { %8 = vsyncpa [#allocation3], 0  ;;  %v199_v12 = vpack.c.bf16 %v24_v11, %v23_v10  ;;  %v25_v13 = vld [vmem:[%s339_s1 + $0x40] sm:$0xff]  ;;  %v26_v14 = vld [vmem:[%s339_s1 + $0x48] sm:$0xff]  ;;  %s246_s23 = smov [#allocation2]  }
   0x8   :  { %v203_v15 = vpack.c.bf16 %v26_v14, %v25_v13  ;;  %v27_v16 = vld [vmem:[%s339_s1 + $0x50] sm:$0xff]  ;;  %v28_v17 = vld [vmem:[%s339_s1 + $0x58] sm:$0xff]  ;;  %v29_v19 = vld [vmem:[%s339_s1 + $0x60] sm:$0xff]  ;;  %s122_s24 = sshll.u32 %s246_s23, 4  ;;  %s123_s24 = int_to_ptr.vmem [resolvable:$true] %s122_s24 }
   0x9   :  { %194 = vmatpush3.bf16.msra.mxu0 %v191_v5  ;;  %v207_v18 = vpack.c.bf16 %v28_v17, %v27_v16  ;;  %v30_v20 = vld [vmem:[%s339_s1 + $0x68] sm:$0xff]  ;;  %v31_v22 = vld [vmem:[%s339_s1 + $0x70] sm:$0xff]  ;;  %v32_v23 = vld [vmem:[%s339_s1 + $0x78] sm:$0xff]  ;;  %s222_s1 = scalar_lea.vmem %s123_s24, 256  ;;  %p227_p1 = scmp.lt.s32.totalorder %s123_s24, %s123_s24 }
   0xa   :  { %196 = vmatprep.subr.bf16.mxu0 %v195_v8  ;;  %v211_v21 = vpack.c.bf16 %v30_v20, %v29_v19  ;;  %v215_v24 = vpack.c.bf16 %v32_v23, %v31_v22  ;;  %v16_v25 = vld [vmem:[%s338_s0 + $0x8] sm:$0xff]  ;;  %v133_v26 = vld [vmem:[%s340_s2] ss:$0 sm:$0xff]  ;;  %p223_p0 = scmp.ne.s32.totalorder %s123_s24, %s222_s1  ;;  %p228_p2 = scmp.lt.s32.totalorder %s222_s1, %s222_s1 }
   0xc   :  { %p229_p3 = por %p228_p2, %p227_p1 }
   0xd   :  { %198 = vmatpush3.bf16.msra.mxu0 %v195_v8 }
   0xe   :  { %200 = vmatprep.subr.bf16.mxu0 %v199_v12  ;;  %p230_p4 = pnand %p229_p3, %p223_p0 }
  0x11   :  { %202 = vmatpush3.bf16.msra.mxu0 %v199_v12 }
  0x12   :  { %204 = vmatprep.subr.bf16.mxu0 %v203_v15 }
  0x15   :  { %206 = vmatpush3.bf16.msra.mxu0 %v203_v15 }
  0x16   :  { %208 = vmatprep.subr.bf16.mxu0 %v207_v18 }
  0x19   :  { %210 = vmatpush3.bf16.msra.mxu0 %v207_v18 }
  0x1a   :  { %212 = vmatprep.subr.bf16.mxu0 %v211_v21 }
  0x1d   :  { %214 = vmatpush3.bf16.msra.mxu0 %v211_v21 }
  0x1e   :  { %216 = vmatprep.subr.bf16.mxu0 %v215_v24 }
  0x21   :  { %218 = vmatpush3.bf16.msra.mxu0 %v215_v24 }
  0x24   :  { %185 = vmatmul.mubr.f32.vlgmr.msra.gmra.mrb[0].mxu0 %v16_v25 }
  0xf7   :  { %v186_v27 = vpop.f32.mrb[0].mxu0 }
  0xf8   :  { %v112_v28 = vadd.f32 %v186_v27, %v133_v26  ;;  %v106_v29 = vpop.f32.mrb[1].mxu0 }
  0xf9   :  { %v107_v30 = vadd.f32 %v133_v26, %v106_v29 }
  0xfa   :  { %116 = vst [vmem:[#allocation2 + $0x8] sm:$0xff] %v112_v28 }
  0xfb   :  { %115 = vst [vmem:[#allocation2] sm:$0xff] %v107_v30 }
  0xfc   :  { %233 = shalt.err (!%p230_p4)
}
  0xfd   :  { %s234_s2 = scalar_lea.hbm %s341_s3, 256 }
  0xfe   :  { %p235_p5 = scmp.ne.s32.totalorder %s341_s3, %s234_s2  ;;  %p238_p6 = scmp.lt.u32.totalorder %s234_s2, %s341_s3 }
 0x100   :  { %p240_p7 = pnand %p238_p6, %p235_p5 }
 0x102   :  { %243 = shalt.err (!%p240_p7)
}
 0x103   :  { %s247_s30 = smov 128   ;;  %s248_s4 = smov 8  }
 0x104   :  { %128 = dma.vmem_to_hbm [thread:$0]  %s123_s24, 256, %s341_s3, [#allocation3], %s247_s30, %s247_s30, %s248_s4  }
 0x105   :  { %244 = dma.done.wait [#allocation3], 256  }
 0x106   :  { %245 = vsyncadd [#allocation3], 4294967040 }
 0x107   :  { %132 = vsyncpa [#allocation3], 1 }

// kernel: gpt2_causal_self_attention.4
= control target key start
LH: loop header
LB: loop body
LE: loop exit
PB: predicated region body
PF: predicated region fallthrough
CT: control target
= control target key end

     0   :  { %s1547_s12 = smov 0   ;;  %s1549_s13 = smov 0   ;;  %s1717_s0 = inlined_call_operand.vmem [shape: f32[2,8,384], index: 0, kind: input, shape index: {}, may-alias: {0,1,2}]   ;;  %s1718_s1 = inlined_call_operand.vmem [shape: f32[2,8,384], index: 1, kind: input, shape index: {}, may-alias: {0,1,2}]   ;;  %s1719_s2 = inlined_call_operand.vmem [shape: f32[2,8,384], index: 2, kind: input, shape index: {}, may-alias: {0,1,2}]   ;;  %s1720_s3 = inlined_call_operand.vmem [shape: f32[2,8,128], index: 3, kind: output, shape index: {}]  }
   0x1   :  { %s1551_s14 = smov 0  }
   0x2 LB: > { %s39_s15 = sadd.s32 1, %s1514_s13  ;;  %p1357_p0 = scmp.ge.s32.totalorder %s1518_s14, 1  ;;  %s1518_s14 = sphi %s1551_s14, %s13_s14   ;;  %s1514_s13 = sphi %s1549_s13, %s1722_s13   ;;  %s1510_s12 = sphi %s1547_s12, %s1721_s12  }
   0x3   : > { %p41_p1 = scmp.ge.s32.totalorder %s39_s15, 2  ;;  %p228_p2 = scmp.lt.s32.totalorder %s1518_s14, 3 }
   0x5   : > { %s1724_s15 = smov (%p41_p1, %s39_s15), 0  ;;  %p229_p3 = pnand %p1357_p0, %p228_p2 }
   0x6   : > { %p290_p4 = scmp.lt.s32.totalorder (!%p229_p3), %s1510_s12, 1  ;;  %vm353_vm0 = vcmask (!%p229_p3), 261120   ;;  %v1520_v0 = vmov (!%p229_p3), 0.0   ;;  %vm1521_vm1 = vmmov (!%p229_p3), 0   ;;  %vm344_vm2 = vcmask (!%p229_p3), 7168   ;;  %s1524_s24 = smov (!%p229_p3), 96  }
   0x7   : > { %232 = sbr.rel (%p229_p3) target bundleno = 1448 (0x5a8), region = 32  ;;  %1396 = vmatprep.subr.mxu0 (!%p229_p3), %v1520_v0  ;;  %354 = vst.msk [vmem:[#allocation4] sm:$0xff] (!%p229_p3), %vm353_vm0, %v1520_v0  ;;  %355 = vst.msk [vmem:[#allocation4 + $0x8] sm:$0xff] (!%p229_p3), %vm353_vm0, %v1520_v0  ;;  %1398 = vmatprep.mubr.msk.f32.mxu0 (!%p229_p3), %vm1521_vm1, %v1520_v0  ;;  %v1522_v3 = vmov (!%p229_p3), -inf   ;;  %v366_v4 = vlaneseq (!%p229_p3)  ;;  %vm457_vm4 = vcmask (!%p229_p3), 64512   ;;  %v1523_v11 = vmov (!%p229_p3), 0  }
   0x8   : > { %356 = vst.msk [vmem:[#allocation4 + $0x10] sm:$0xff] (!%p229_p3), %vm353_vm0, %v1520_v0  ;;  %357 = vst.msk [vmem:[#allocation4 + $0x18] sm:$0xff] (!%p229_p3), %vm353_vm0, %v1520_v0  ;;  %1401 = vmatprep.subr.mxu1 (!%p229_p3), %v1520_v0  ;;  %1403 = vmatprep.mubr.msk.f32.mxu1 (!%p229_p3), %vm1521_vm1, %v1520_v0  ;;  %s1525_s25 = smov (!%p229_p3), 64   ;;  %s1526_s26 = smov (!%p229_p3), 32   ;;  %vm1201_vm5 = vcmask (!%p229_p3), 523264   ;;  %vm1203_vm6 = vcmask (!%p229_p3), 785408  }
   0x9   : > { %345 = vst.msk [vmem:[#allocation2] sm:$0xff] (!%p229_p3), %vm344_vm2, %v1522_v3  ;;  %346 = vst.msk [vmem:[#allocation2 + $0x8] sm:$0xff] (!%p229_p3), %vm344_vm2, %v1522_v3  ;;  %v1609_v5 = vshrl.u32 (!%p229_p3), %v366_v4, 7  ;;  %v1611_v6 = vand.u32 (!%p229_p3), 127, %v366_v4  ;;  %1470 = vset.pattern.permute.xlu0 (!%p229_p3), %v1523_v11  ;;  %1471 = vset.pattern.permute.xlu1 (!%p229_p3), %v1523_v11 }
   0xa   : > { %347 = vst.msk [vmem:[#allocation2 + $0x10] sm:$0xff] (!%p229_p3), %vm344_vm2, %v1522_v3  ;;  %348 = vst.msk [vmem:[#allocation2 + $0x18] sm:$0xff] (!%p229_p3), %vm344_vm2, %v1522_v3 }
   0xb   : > { %349 = vst.msk [vmem:[#allocation3] sm:$0xff] (!%p229_p3), %vm344_vm2, %v1520_v0  ;;  %350 = vst.msk [vmem:[#allocation3 + $0x8] sm:$0xff] (!%p229_p3), %vm344_vm2, %v1520_v0  ;;  %vm374_vm3 = vcmp.le.s32.totalorder (!%p229_p3), %v1611_v6, %v1609_v5 }
   0xc   : > { %351 = vst.msk [vmem:[#allocation3 + $0x10] sm:$0xff] (!%p229_p3), %vm344_vm2, %v1520_v0  ;;  %352 = vst.msk [vmem:[#allocation3 + $0x18] sm:$0xff] (!%p229_p3), %vm344_vm2, %v1520_v0 }
   0xe   : > { %s1726_s12 = smov (!%p290_p4, %s1510_s12), 1 }
   0xf   : > { %s1582_s16 = smul.u32 24, %s1726_s12  ;;  %s1361_s4 = sshll.u32 %s1726_s12, 3 }
  0x10   : > { %v1625_v12 = vld [vmem:[#allocation2] sm:$0xff]  ;;  %v644_v41 = vld [vmem:[#allocation2 + $0x8] sm:$0xff]  ;;  %s339_s7 = scalar_lea.vmem %s1720_s3, %s1361_s4 }
  0x11   : > { %s1377_s17 = sadd.s32 8, %s1582_s16  ;;  %s301_s20 = scalar_lea.vmem %s1717_s0, %s1582_s16  ;;  %v836_v44 = vld [vmem:[#allocation2 + $0x10] sm:$0xff]  ;;  %v1027_v48 = vld [vmem:[#allocation2 + $0x18] sm:$0xff] }
  0x12   : > { %s314_s23 = scalar_lea.vmem %s1718_s1, %s1377_s17  ;;  %v375_v2 = vld [vmem:[%s301_s20] sm:$0xff]  ;;  %s1379_s27 = sadd.s32 16, %s1582_s16 }
  0x13   : > { %v376_v1 = vld [vmem:[%s314_s23] sm:$0xff]  ;;  %s328_s30 = scalar_lea.vmem %s1719_s2, %s1379_s27 }
  0x14   : > { %1397 = vmatpush3.xpose.msk.msra.mxu0 %vm353_vm0, %v376_v1  ;;  %566 = vrot.lane.b32.xlu1 %v376_v1, %s1524_s24  ;;  %v377_v16 = vld [vmem:[%s328_s30] sm:$0xff] }
  0x15   : > { %1411 = vmatprep.subr.mxu0 %v1520_v0  ;;  %1402 = vmatpush3.msra.mxu1 %v377_v16 }
  0x16   : > { %1406 = vmatprep.subr.mxu1 %v1520_v0 }
  0x17   : > { %1399 = vmatmul.mubr.msk.f32.vlgmr.msra.gmra.mrb[0].mxu0 %vm353_vm0, %v375_v2 }
  0x18   : > { %1413 = vmatprep.mubr.msk.f32.mxu0 %vm1521_vm1, %v1520_v0  ;;  %564 = vrot.lane.b32.xlu1 %v375_v2, %s1524_s24 }
  0x1c   : > { %758 = vrot.lane.b32.xlu1 %v376_v1, %s1525_s25 }
  0x20   : > { %756 = vrot.lane.b32.xlu1 %v375_v2, %s1525_s25 }
  0x24   : > { %949 = vrot.lane.b32.xlu1 %v376_v1, %s1526_s26 }
  0x28   : > { %947 = vrot.lane.b32.xlu1 %v375_v2, %s1526_s26 }
  0x86   : > { %v567_v17 = vpop.permute.xlu1 %566 }
  0x8a   : > { %v565_v20 = vpop.permute.xlu1 %564 }
  0x8e   : > { %v759_v22 = vpop.permute.xlu1 %758 }
  0x92   : > { %v757_v23 = vpop.permute.xlu1 %756 }
  0x96   : > { %v950_v25 = vpop.permute.xlu1 %949 }
  0x9a   : > { %v948_v26 = vpop.permute.xlu1 %947 }
  0xea   : > { %v451_v7 = vpop.f32.mrb[0].mxu0 }
  0xeb   : > { %v455_v8 = vsel %vm374_vm3, %v451_v7, -1e+30  ;;  %v1400_v9 = vpop.f32.mrb[1].mxu0 }
  0xec   : > { %v458_v10 = vsel %vm457_vm4, %v455_v8, -inf }
  0xed   : > { %459 = vmax.xlane.f32.xlu0 %v458_v10 }
 0x17a   : > { %v460_v13 = vpop.xlane.xlu0 %459 }
 0x17b   : > { %v1628_v14 = vmax.f32 %v1625_v12, %v460_v13 }
 0x17d   : > { %v462_v15 = vsub.f32 %v1625_v12, %v1628_v14  ;;  %563 = vst.msk [vmem:[#allocation2] sm:$0xff] %vm344_vm2, %v1628_v14  ;;  %467 = vperm.xlu0 %1470, %v1628_v14   ;;  %v661_v14 = vld [vmem:[#allocation3 + $0x8] sm:$0xff] }
 0x17f   : > { %v463_v11 = vmul.f32 1.442695, %v462_v15 }
 0x1fc   : > { %v468_v18 = vpop.permute.xlu0 %467 }
 0x1fd   : > { %v470_v19 = vsub.f32 %v455_v8, %v468_v18 }
 0x1ff   : > { %v471_v21 = vmul.f32 1.442695, %v470_v19  ;;  %v473_v19 = vld [vmem:[#allocation3] sm:$0xff] }
 0x201   : > { %1472 = vpow2.f32 %v471_v21 }
 0x20b   : > { %v1473_v24 = vpop.eup %1472 }
 0x20c   : > { %1404 = vmatmul.mubr.msk.f32.vlgmr.msra.gmra.mrb[0].mxu1 %vm457_vm4, %v1473_v24  ;;  %v475_v53 = vsel %vm457_vm4, %v1473_v24, 0.0 }
 0x20d   : > { %1407 = vmatpush3.xpose.msk.msra.mxu1 %vm353_vm0, %v567_v17  ;;  %1408 = vmatprep.mubr.msk.f32.mxu1 %vm1521_vm1, %v1520_v0 }
 0x20e   : > { %1416 = vmatprep.subr.mxu1 %v1520_v0 }
 0x210   : > { %1409 = vmatmul.mubr.msk.f32.vlgmr.msra.gmra.mrb[2].mxu1 %vm353_vm0, %v565_v20 }
 0x211   : > { %1417 = vmatpush3.xpose.msk.msra.mxu1 %vm353_vm0, %v759_v22  ;;  %1418 = vmatprep.mubr.msk.f32.mxu1 %vm1521_vm1, %v1520_v0 }
 0x212   : > { %1426 = vmatprep.subr.mxu1 %v1520_v0 }
 0x214   : > { %1419 = vmatmul.mubr.msk.f32.vlgmr.msra.gmra.mrb[4].mxu1 %vm353_vm0, %v757_v23 }
 0x215   : > { %1427 = vmatpush3.xpose.msk.msra.mxu1 %vm353_vm0, %v950_v25  ;;  %1428 = vmatprep.mubr.msk.f32.mxu1 %vm1521_vm1, %v1520_v0  ;;  %v853_v25 = vld [vmem:[#allocation3 + $0x10] sm:$0xff] }
 0x218   : > { %1429 = vmatmul.mubr.msk.f32.vlgmr.msra.gmra.mrb[6].mxu1 %vm353_vm0, %v948_v26 }
 0x2df   : > { %v1655_v27 = vpop.f32.mrb[0].mxu1 }
 0x2e0   : > { %v1405_v28 = vpop.f32.mrb[1].mxu1 }
 0x2e3   : > { %v638_v29 = vpop.f32.mrb[2].mxu1 }
 0x2e4   : > { %v642_v30 = vsel %vm374_vm3, %v638_v29, -1e+30  ;;  %v1410_v31 = vpop.f32.mrb[3].mxu1 }
 0x2e5   : > { %v645_v32 = vsel %vm457_vm4, %v642_v30, -inf }
 0x2e6   : > { %646 = vmax.xlane.f32.xlu1 %v645_v32 }
 0x2e7   : > { %v830_v33 = vpop.f32.mrb[4].mxu1 }
 0x2e8   : > { %v834_v34 = vsel %vm374_vm3, %v830_v33, -1e+30  ;;  %v1420_v35 = vpop.f32.mrb[5].mxu1 }
 0x2e9   : > { %v837_v36 = vsel %vm457_vm4, %v834_v34, -inf }
 0x2ea   : > { %838 = vmax.xlane.f32.xlu0 %v837_v36  ;;  %v481_v36 = vld [vmem:[#allocation4] sm:$0xff] }
 0x2eb   : > { %v1021_v37 = vpop.f32.mrb[6].mxu1 }
 0x2ec   : > { %v1025_v38 = vsel %vm374_vm3, %v1021_v37, -1e+30  ;;  %v1430_v39 = vpop.f32.mrb[7].mxu1 }
 0x2ed   : > { %v1028_v40 = vsel %vm457_vm4, %v1025_v38, -inf }
 0x2ee   : > { %1029 = vmax.xlane.f32.xlu1 %v1028_v40 }
 0x373   : > { %v647_v42 = vpop.xlane.xlu1 %646 }
 0x374   : > { %v648_v43 = vmax.f32 %v644_v41, %v647_v42 }
 0x376   : > { %v649_v45 = vsub.f32 %v644_v41, %v648_v43  ;;  %755 = vst.msk [vmem:[#allocation2 + $0x8] sm:$0xff] %vm344_vm2, %v648_v43  ;;  %654 = vperm.xlu1 %1471, %v648_v43  }
 0x377   : > { %v839_v46 = vpop.xlane.xlu0 %838 }
 0x378   : > { %v840_v47 = vmax.f32 %v836_v44, %v839_v46  ;;  %v650_v8 = vmul.f32 1.442695, %v649_v45  ;;  %v669_v45 = vld [vmem:[#allocation4 + $0x8] sm:$0xff] }
 0x37a   : > { %v841_v49 = vsub.f32 %v836_v44, %v840_v47  ;;  %946 = vst.msk [vmem:[#allocation2 + $0x10] sm:$0xff] %vm344_vm2, %v840_v47  ;;  %846 = vperm.xlu0 %1470, %v840_v47  }
 0x37b   : > { %v1030_v50 = vpop.xlane.xlu1 %1029 }
 0x37c   : > { %v1031_v51 = vmax.f32 %v1027_v48, %v1030_v50  ;;  %v842_v13 = vmul.f32 1.442695, %v841_v49 }
 0x37e   : > { %v1032_v52 = vsub.f32 %v1027_v48, %v1031_v51  ;;  %1137 = vst.msk [vmem:[#allocation2 + $0x18] sm:$0xff] %vm344_vm2, %v1031_v51  ;;  %1037 = vperm.xlu1 %1471, %v1031_v51   ;;  %v861_v48 = vld [vmem:[#allocation4 + $0x10] sm:$0xff] }
 0x380   : > { %v1033_v10 = vmul.f32 1.442695, %v1032_v52 }
 0x382   : > { %677 = vrot.lane.b32.xlu1 %v377_v16, %s1524_s24 }
 0x386   : > { %868 = vrot.lane.b32.xlu1 %v377_v16, %s1525_s25 }
 0x38a   : > { %1059 = vrot.lane.b32.xlu1 %v377_v16, %s1526_s26 }
 0x3ae   : > { %476 = vadd.xlane.f32.xlu1 %v475_v53 }
 0x3f5   : > { %v655_v54 = vpop.permute.xlu1 %654 }
 0x3f6   : > { %v657_v55 = vsub.f32 %v642_v30, %v655_v54  ;;  %v1044_v30 = vld [vmem:[#allocation3 + $0x18] sm:$0xff] }
 0x3f8   : > { %v658_v56 = vmul.f32 1.442695, %v657_v55 }
 0x3f9   : > { %v847_v57 = vpop.permute.xlu0 %846 }
 0x3fa   : > { %1474 = vpow2.f32 %v658_v56  ;;  %v849_v58 = vsub.f32 %v834_v34, %v847_v57 }
 0x3fc   : > { %v850_v59 = vmul.f32 1.442695, %v849_v58 }
 0x3fd   : > { %v1038_v60 = vpop.permute.xlu1 %1037 }
 0x3fe   : > { %1476 = vpow2.f32 %v850_v59  ;;  %v1040_v61 = vsub.f32 %v1025_v38, %v1038_v60 }
 0x400   : > { %v1041_v62 = vmul.f32 1.442695, %v1040_v61 }
 0x401   : > { %v678_v63 = vpop.permute.xlu1 %677 }
 0x402   : > { %1478 = vpow2.f32 %v1041_v62  ;;  %1412 = vmatpush3.msra.mxu0 %v678_v63 }
 0x403   : > { %1421 = vmatprep.subr.mxu0 %v1520_v0  ;;  %1480 = vpow2.f32 %v650_v8 }
 0x404   : > { %v1475_v1 = vpop.eup %1474  ;;  %1482 = vpow2.f32 %v1033_v10 }
 0x405   : > { %1414 = vmatmul.mubr.msk.f32.vlgmr.msra.gmra.mrb[2].mxu0 %vm457_vm4, %v1475_v1  ;;  %v663_v2 = vsel %vm457_vm4, %v1475_v1, 0.0  ;;  %v869_v3 = vpop.permute.xlu1 %868  ;;  %1484 = vpow2.f32 %v463_v11 }
 0x406   : > { %664 = vadd.xlane.f32.xlu0 %v663_v2  ;;  %1422 = vmatpush3.msra.mxu0 %v869_v3  ;;  %1486 = vpow2.f32 %v842_v13 }
 0x407   : > { %1423 = vmatprep.mubr.msk.f32.mxu0 %vm1521_vm1, %v1520_v0  ;;  %1431 = vmatprep.subr.mxu0 %v1520_v0 }
 0x408   : > { %v1477_v4 = vpop.eup %1476 }
 0x409   : > { %1424 = vmatmul.mubr.msk.f32.vlgmr.msra.gmra.mrb[4].mxu0 %vm457_vm4, %v1477_v4  ;;  %v855_v5 = vsel %vm457_vm4, %v1477_v4, 0.0  ;;  %v1060_v6 = vpop.permute.xlu1 %1059 }
 0x40a   : > { %856 = vadd.xlane.f32.xlu1 %v855_v5  ;;  %1432 = vmatpush3.msra.mxu0 %v1060_v6 }
 0x40b   : > { %1433 = vmatprep.mubr.msk.f32.mxu0 %vm1521_vm1, %v1520_v0 }
 0x40c   : > { %v1479_v7 = vpop.eup %1478 }
 0x40d   : > { %1434 = vmatmul.mubr.msk.f32.vlgmr.msra.gmra.mrb[6].mxu0 %vm457_vm4, %v1479_v7  ;;  %v1046_v9 = vsel %vm457_vm4, %v1479_v7, 0.0  ;;  %v1481_v16 = vpop.eup %1480 }
 0x40e   : > { %1047 = vadd.xlane.f32.xlu0 %v1046_v9  ;;  %v1483_v0 = vpop.eup %1482  ;;  %v662_v15 = vmul.f32 %v1481_v16, %v661_v14 }
 0x40f   : > { %v1485_v17 = vpop.eup %1484  ;;  %v1045_v32 = vmul.f32 %v1483_v0, %v1044_v30 }
 0x410   : > { %v1487_v18 = vpop.eup %1486  ;;  %v474_v20 = vmul.f32 %v1485_v17, %v473_v19 }
 0x411   : > { %v854_v28 = vmul.f32 %v1487_v18, %v853_v25 }
 0x41b   : > { %672 = vperm.xlu1 %1471, %v1481_v16  }
 0x41f   : > { %1055 = vperm.xlu1 %1471, %v1483_v0  }
 0x424   : > { %484 = vperm.xlu0 %1470, %v1485_v17  }
 0x428   : > { %864 = vperm.xlu0 %1470, %v1487_v18  }
 0x43b   : > { %v477_v21 = vpop.xlane.xlu1 %476 }
 0x43c   : > { %v478_v22 = vadd.f32 %v477_v21, %v474_v20 }
 0x43e   : > { %480 = vst.msk [vmem:[#allocation3] sm:$0xff] %vm344_vm2, %v478_v22 }
 0x445   : > { %v1142_v23 = vld [vmem:[#allocation3] sm:$0xff] }
 0x446   : > { %1488 = vrcp.f32 %v1142_v23 }
 0x450   : > { %v1489_v12 = vpop.eup %1488 }
 0x451   : > { %1147 = vperm.xlu1 %1471, %v1489_v12  }
 0x493   : > { %v665_v24 = vpop.xlane.xlu0 %664 }
 0x494   : > { %v666_v26 = vadd.f32 %v665_v24, %v662_v15 }
 0x496   : > { %667 = vst.msk [vmem:[#allocation3 + $0x8] sm:$0xff] %vm344_vm2, %v666_v26 }
 0x497   : > { %v857_v29 = vpop.xlane.xlu1 %856 }
 0x498   : > { %v858_v31 = vadd.f32 %v857_v29, %v854_v28 }
 0x49a   : > { %859 = vst.msk [vmem:[#allocation3 + $0x10] sm:$0xff] %vm344_vm2, %v858_v31 }
 0x49b   : > { %v1048_v33 = vpop.xlane.xlu0 %1047  ;;  %v673_v46 = vpop.permute.xlu1 %672 }
 0x49c   : > { %v1049_v34 = vadd.f32 %v1048_v33, %v1045_v32  ;;  %v675_v47 = vmul.f32 %v673_v46, %v669_v45 }
 0x49d   : > { %v1154_v35 = vld [vmem:[#allocation3 + $0x8] sm:$0xff] }
 0x49e   : > { %1050 = vst.msk [vmem:[#allocation3 + $0x18] sm:$0xff] %vm344_vm2, %v1049_v34  ;;  %1490 = vrcp.f32 %v1154_v35 }
 0x49f   : > { %v1056_v54 = vpop.permute.xlu1 %1055 }
 0x4a1   : > { %v1166_v37 = vld [vmem:[#allocation3 + $0x10] sm:$0xff] }
 0x4a2   : > { %1492 = vrcp.f32 %v1166_v37 }
 0x4a3   : > { %v485_v38 = vpop.permute.xlu0 %484 }
 0x4a4   : > { %v487_v39 = vmul.f32 %v485_v38, %v481_v36 }
 0x4a5   : > { %v1178_v40 = vld [vmem:[#allocation3 + $0x18] sm:$0xff] }
 0x4a6   : > { %v561_v41 = vadd.f32 %v1655_v27, %v487_v39  ;;  %1494 = vrcp.f32 %v1178_v40  ;;  %v1052_v27 = vld [vmem:[#allocation4 + $0x18] sm:$0xff] }
 0x4a7   : > { %v865_v49 = vpop.permute.xlu0 %864  ;;  %v1058_v58 = vmul.f32 %v1056_v54, %v1052_v27 }
 0x4a8   : > { %v1491_v42 = vpop.eup %1490  ;;  %562 = vst.msk [vmem:[#allocation4] sm:$0xff] %vm353_vm0, %v561_v41  ;;  %v867_v53 = vmul.f32 %v865_v49, %v861_v48 }
 0x4a9   : > { %1159 = vperm.xlu0 %1470, %v1491_v42  }
 0x4ac   : > { %v1493_v43 = vpop.eup %1492 }
 0x4ad   : > { %1171 = vperm.xlu1 %1471, %v1493_v43  }
 0x4af   : > { %v1141_v9 = vld [vmem:[#allocation4] sm:$0xff] }
 0x4b0   : > { %v1495_v44 = vpop.eup %1494 }
 0x4b1   : > { %1183 = vperm.xlu0 %1470, %v1495_v44  }
 0x4d0   : > { %v1148_v62 = vpop.permute.xlu1 %1147 }
 0x4d1   : > { %v1150_v11 = vmul.f32 %v1148_v62, %v1141_v9 }
 0x4d8   : > { %v749_v50 = vpop.f32.mrb[2].mxu0 }
 0x4d9   : > { %v753_v51 = vadd.f32 %v749_v50, %v675_v47  ;;  %v1415_v52 = vpop.f32.mrb[3].mxu0 }
 0x4db   : > { %754 = vst.msk [vmem:[#allocation4 + $0x8] sm:$0xff] %vm353_vm0, %v753_v51 }
 0x4dc   : > { %v940_v55 = vpop.f32.mrb[4].mxu0 }
 0x4dd   : > { %v944_v56 = vadd.f32 %v940_v55, %v867_v53  ;;  %v1425_v57 = vpop.f32.mrb[5].mxu0 }
 0x4df   : > { %945 = vst.msk [vmem:[#allocation4 + $0x10] sm:$0xff] %vm353_vm0, %v944_v56 }
 0x4e0   : > { %v1131_v59 = vpop.f32.mrb[6].mxu0 }
 0x4e1   : > { %v1135_v60 = vadd.f32 %v1131_v59, %v1058_v58  ;;  %v1435_v61 = vpop.f32.mrb[7].mxu0 }
 0x4e2   : > { %v1152_v1 = vld [vmem:[#allocation4 + $0x8] sm:$0xff] }
 0x4e3   : > { %1136 = vst.msk [vmem:[#allocation4 + $0x18] sm:$0xff] %vm353_vm0, %v1135_v60 }
 0x4e6   : > { %v1164_v4 = vld [vmem:[#allocation4 + $0x10] sm:$0xff] }
 0x4ea   : > { %v1176_v7 = vld [vmem:[#allocation4 + $0x18] sm:$0xff] }
 0x528   : > { %v1160_v63 = vpop.permute.xlu0 %1159 }
 0x529   : > { %v1162_v2 = vmul.f32 %v1160_v63, %v1152_v1 }
 0x52b   : > { %1188 = vrot.lane.b32.xlu1 %v1162_v2, %s1526_s26 }
 0x52c   : > { %v1172_v3 = vpop.permute.xlu1 %1171 }
 0x52d   : > { %v1174_v5 = vmul.f32 %v1172_v3, %v1164_v4 }
 0x52f   : > { %1192 = vrot.lane.b32.xlu0 %v1174_v5, %s1525_s25 }
 0x530   : > { %v1184_v6 = vpop.permute.xlu0 %1183 }
 0x531   : > { %v1186_v8 = vmul.f32 %v1184_v6, %v1176_v7 }
 0x533   : > { %1196 = vrot.lane.b32.xlu1 %v1186_v8, %s1524_s24 }
 0x59d   : > { %v1189_v10 = vpop.permute.xlu1 %1188 }
 0x59e   : > { %v1200_v16 = vsel %vm353_vm0, %v1150_v11, %v1189_v10 }
 0x5a1   : > { %v1193_v13 = vpop.permute.xlu0 %1192 }
 0x5a2   : > { %v1202_v0 = vsel %vm1201_vm5, %v1200_v16, %v1193_v13 }
 0x5a5   : > { %v1197_v17 = vpop.permute.xlu1 %1196 }
 0x5a6   : > { %v1204_v18 = vsel %vm1203_vm6, %v1202_v0, %v1197_v17 }
 0x5a7   : > { %1205 = vst [vmem:[%s339_s7] sm:$0xff] %v1204_v18 }
 0x5a8 PF: > { %s13_s14 = sadd.s32 1, %s1518_s14   ;;  %s1721_s12 = smov %s1514_s13 }
 0x5a9   : > { %p10_p5 = scmp.ge.s32.totalorder %s13_s14, 4   ;;  %s1722_s13 = smov %s1724_s15 }
 0x5ab   :  { %12 = sbr.rel (!%p10_p5) target bundleno = 2 (0x2), region = 95 }

</bundles_post_ra>
